<compile_context>
chip_gen: v5e
topology: v5e:2x2
jax: 0.10.0
libtpu: 0.0.40
codegen_flags: <defaults>
</compile_context>

<pallas_src>
import numpy as np
import jax
import jax.numpy as jnp
from jax.experimental import pallas as pl
from jax.experimental.pallas import tpu as pltpu

# ---- hyperparameters mirroring PointNetPlusPlus_dense (shape_code=False) ----
INPUT_DIM = 2
OUT_DIM = 2
N_FREQS = 10
EMB_DIM = INPUT_DIM * (1 + 2 * N_FREQS)     # 42
MLP_UNITS = (20, 40, 80, 60)                # MLP_stacked units (fc_1_1 / fc_4)
HID = MLP_UNITS[-1]                         # 60
HID_PAD = 64                                # 60 padded; lanes 60-61 carry rel-xyz in stage2
RADIUS = 1.0
NSAMPLE = 4
SA_MLP = (30, 60)                           # PointNetSetAbstraction mlp
SA_IN = 2 * HID + INPUT_DIM                 # 122
OUT_PAD = 128                               # fc_5 output padded to a full lane register
BN_EPS = 1e-5
VMEM_LIMIT = 32 * 1024 * 1024               # fits v5e/v6e/v7x scoped VMEM comfortably
MAX_TILE = 2048                             # v6e could take 4096; keep 2048 portable (v7x 64 MiB)
BF16 = jnp.bfloat16
F32 = jnp.float32


# =============================== Pallas kernels ===============================

def _stage1_kernel(pts_ref, freqs_ref, w1x_ref, w1s_ref, w1c_ref, b11_ref,
                   w12_ref, b12_ref, w13_ref, b13_ref, w14_ref, b14_ref,
                   loc_ref, tmax_ref):
    # pts_ref: (1, TN, 2) f32 -> loc_ref: (1, TN, 64) bf16, tmax_ref: (1, 1, 64) f32
    x = pts_ref[0]                                              # (TN, 2) f32
    freqs = freqs_ref[...]                                      # (1, 10) exact powers of two
    # In-kernel NeRF embedding: angles in f32 (exact pow-2 scaling) so the
    # high-frequency sin/cos channels keep full fidelity; EUP does sin/cos.
    a0 = x[:, 0:1] * freqs                                      # (TN, 10)
    a1 = x[:, 1:2] * freqs                                      # (TN, 10)
    # First fused Linear+BN layer (42 -> 20), decomposed over embedding blocks;
    # the 2-wide identity block is a broadcast multiply-add (no K=2 matmul).
    w1x = w1x_ref[...].astype(F32)
    acc = x[:, 0:1] * w1x[0:1, :] + x[:, 1:2] * w1x[1:2, :]
    acc = acc + jnp.dot(jnp.sin(a0).astype(BF16), w1s_ref[0], preferred_element_type=F32)
    acc = acc + jnp.dot(jnp.sin(a1).astype(BF16), w1s_ref[1], preferred_element_type=F32)
    acc = acc + jnp.dot(jnp.cos(a0).astype(BF16), w1c_ref[0], preferred_element_type=F32)
    acc = acc + jnp.dot(jnp.cos(a1).astype(BF16), w1c_ref[1], preferred_element_type=F32)
    h = jnp.maximum(acc + b11_ref[...], 0.0)
    # Remaining fc_1_1 layers (20->40->80->60pad64); bf16 operands, f32 accumulation.
    h = jnp.maximum(jnp.dot(h.astype(BF16), w12_ref[...], preferred_element_type=F32) + b12_ref[...], 0.0)
    h = jnp.maximum(jnp.dot(h.astype(BF16), w13_ref[...], preferred_element_type=F32) + b13_ref[...], 0.0)
    h = jnp.maximum(jnp.dot(h.astype(BF16), w14_ref[...], preferred_element_type=F32) + b14_ref[...], 0.0)
    loc_ref[0] = h.astype(loc_ref.dtype)                # bf16 local features (gather source)
    tmax_ref[0] = jnp.max(h, axis=0, keepdims=True)     # per-tile max; global max reduced in JAX


def _stage2_kernel(gfeat_ref, gbias_ref,
                   wa_ref, wb_ref, bb_ref,
                   w41_ref, b41_ref, w42_ref, b42_ref,
                   w43_ref, b43_ref, w44_ref, b44_ref,
                   w5_ref, b5_ref, out_ref):
    # gfeat_ref: (1, K, TN, 64) bf16 (ch 0-59 local feats, 60-61 rel-xyz) -> out: (1, TN, 128) bf16
    k = gfeat_ref.shape[1]
    tn = gfeat_ref.shape[2]
    c = gfeat_ref.shape[3]
    gf = gfeat_ref[0].reshape(k * tn, c)                               # (K*TN, 64) bf16
    # SA conv1 (122 -> 30): neighbor axis folded into rows; xyz rows packed
    # into wa, global-feature part + conv bias + BN pre-folded into gbias.
    h = jnp.dot(gf, wa_ref[...], preferred_element_type=F32)           # (K*TN, 30)
    h = jnp.maximum(h + gbias_ref[0], 0.0)
    # SA conv2 (30 -> 60)
    h = jnp.maximum(jnp.dot(h.astype(BF16), wb_ref[...], preferred_element_type=F32) + bb_ref[...], 0.0)
    # max over the nsample neighbors (rows are neighbor-major: row = k*TN + n)
    h = jnp.max(h.reshape(k, tn, h.shape[-1]), axis=0)                 # (TN, 60)
    # fc_4 = MLP_stacked(60, [20, 40, 80, 60]); Linear+BN folded, ReLU.
    h = jnp.maximum(jnp.dot(h.astype(BF16), w41_ref[...], preferred_element_type=F32) + b41_ref[...], 0.0)
    h = jnp.maximum(jnp.dot(h.astype(BF16), w42_ref[...], preferred_element_type=F32) + b42_ref[...], 0.0)
    h = jnp.maximum(jnp.dot(h.astype(BF16), w43_ref[...], preferred_element_type=F32) + b43_ref[...], 0.0)
    h = jnp.maximum(jnp.dot(h.astype(BF16), w44_ref[...], preferred_element_type=F32) + b44_ref[...], 0.0)
    # fc_5 (60 -> 128 lanes, columns >= OUT_DIM zero); bf16 store halves writeback bytes.
    out = jnp.dot(h.astype(BF16), w5_ref[...], preferred_element_type=F32) + b5_ref[...]
    out_ref[0] = out.astype(out_ref.dtype)


def stage1(pts, prm, tn):
    B, N, _ = pts.shape
    n_tiles = N // tn
    freqs = jnp.asarray((2.0 ** np.arange(N_FREQS)).reshape(1, N_FREQS), dtype=F32)
    rep = lambda a: pl.BlockSpec(a.shape, lambda n, b: (0,) * a.ndim)
    weights = [freqs, prm["w1x"], prm["w1s"], prm["w1c"], prm["b11"],
               prm["w12"], prm["b12"], prm["w13"], prm["b13"], prm["w14"], prm["b14"]]
    return pl.pallas_call(
        _stage1_kernel,
        out_shape=(jax.ShapeDtypeStruct((B, N, HID_PAD), BF16),
                   jax.ShapeDtypeStruct((B, n_tiles, HID_PAD), F32)),
        grid=(n_tiles, B),
        in_specs=[pl.BlockSpec((1, tn, INPUT_DIM), lambda n, b: (b, n, 0))]
                 + [rep(a) for a in weights],
        out_specs=(pl.BlockSpec((1, tn, HID_PAD), lambda n, b: (b, n, 0)),
                   pl.BlockSpec((1, 1, HID_PAD), lambda n, b: (b, n, 0))),
        compiler_params=pltpu.CompilerParams(
            dimension_semantics=("parallel", "parallel"),
            vmem_limit_bytes=VMEM_LIMIT),
    )(pts, *weights)


def stage2(gfeat, gbias, prm, tn):
    B, K, N, _ = gfeat.shape
    n_tiles = N // tn
    rep = lambda a: pl.BlockSpec(a.shape, lambda n, b: (0,) * a.ndim)
    weights = [prm["wa_feat"], prm["wb"], prm["bb"],
               prm["w41"], prm["b41"], prm["w42"], prm["b42"],
               prm["w43"], prm["b43"], prm["w44"], prm["b44"],
               prm["w5"], prm["b5"]]
    return pl.pallas_call(
        _stage2_kernel,
        out_shape=jax.ShapeDtypeStruct((B, N, OUT_PAD), BF16),
        grid=(n_tiles, B),
        in_specs=[pl.BlockSpec((1, K, tn, HID_PAD), lambda n, b: (b, 0, n, 0)),
                  pl.BlockSpec((1, 1, SA_MLP[0]), lambda n, b: (b, 0, 0))]
                 + [rep(a) for a in weights],
        out_specs=pl.BlockSpec((1, tn, OUT_PAD), lambda n, b: (b, n, 0)),
        compiler_params=pltpu.CompilerParams(
            dimension_semantics=("parallel", "parallel"),
            vmem_limit_bytes=VMEM_LIMIT),
    )(gfeat, gbias, *weights)


# ================================ JAX glue ====================================

def positional_embedding(p):
    # Reference-only embedding layout: [x, sin(x0*2^i), sin(x1*2^i), cos(x0*2^i), cos(x1*2^i)]
    # (a fixed permutation of the torch Embedding channels; equivalent up to weight-row order).
    freqs = jnp.asarray(2.0 ** np.arange(N_FREQS), dtype=F32)
    a = p[..., :, None] * freqs                              # (B, N, 2, 10)
    a = a.reshape(p.shape[:-1] + (INPUT_DIM * N_FREQS,))     # (B, N, 20)
    return jnp.concatenate([p, jnp.sin(a), jnp.cos(a)], axis=-1)


def query_ball(xyz, radius, nsample):
    # torch query_ball_point with new_xyz == xyz ("dense": every point is a center)
    B, N, _ = xyz.shape
    d2 = jnp.sum((xyz[:, :, None, :] - xyz[:, None, :, :]) ** 2, axis=-1)
    idx = jnp.broadcast_to(jnp.arange(N), d2.shape)
    idx = jnp.where(d2 > radius ** 2, N, idx)
    idx = jnp.sort(idx, axis=-1)[..., :nsample]
    first = idx[..., :1]
    return jnp.where(idx == N, first, idx)


def gather(feats, idx):
    # feats: (B, N, C), idx: (B, ...) int32 -> (B, ..., C)
    return jax.vmap(lambda f, i: f[i])(feats, idx)


def _pick_tile(n):
    # Biggest point tile <= MAX_TILE (per-step working set stays << VMEM even at 2048).
    if n <= MAX_TILE:
        return n
    for t in range(MAX_TILE, 7, -8):
        if n % t == 0:
            return t
    # TODO(synk): ragged tails (N with no 8-aligned divisor) need masking support.
    raise ValueError("N must be <= MAX_TILE or have an 8-aligned divisor <= MAX_TILE")


def pointnetpp_forward(x, prm):
    x_pose = x[..., :INPUT_DIM]
    B, N, _ = x_pose.shape
    tn = _pick_tile(N)
    local, tmax = stage1(x_pose, prm, tn)                     # (B,N,64) bf16, (B,n_tiles,64) f32
    g = jnp.max(tmax, axis=1, keepdims=True)                  # (B,1,64) global max
    # Global-feature contribution + conv bias folded to a per-batch (1,30) bias.
    gbias = g @ prm["wa_glob"] + prm["ba"]                    # (B,1,30)
    idx = query_ball(x_pose, RADIUS, NSAMPLE)                 # (B,N,K)
    idx_t = jnp.swapaxes(idx, 1, 2)                           # (B,K,N): gathered tensor lands K-major
    gfeat = gather(local, idx_t)                              # (B,K,N,64) bf16 (ch 60-63 zero)
    gxyz = gather(x_pose, idx_t) - x_pose[:, None, :, :]      # (B,K,N,2)  relative xyz
    # Pack relative xyz into the padding lanes 60-61 (single lane-dense input stream).
    gfeat = jax.lax.dynamic_update_slice_in_dim(gfeat, gxyz.astype(BF16), HID, axis=3)
    out = stage2(gfeat, gbias, prm, tn)                       # (B,N,128) bf16
    return out[..., :OUT_DIM].astype(F32)


def forward_ref(x, prm):
    # pure-JAX reference (same math, un-split f32 weights) used as a sanity check
    f32 = lambda a: a.astype(F32)
    xp = x[..., :INPUT_DIM]
    emb = positional_embedding(xp)                                           # (B,N,42)
    w11 = jnp.concatenate([f32(prm["w1x"]),
                           f32(prm["w1s"]).reshape(INPUT_DIM * N_FREQS, MLP_UNITS[0]),
                           f32(prm["w1c"]).reshape(INPUT_DIM * N_FREQS, MLP_UNITS[0])], axis=0)
    h = jnp.maximum(emb @ w11 + prm["b11"], 0.0)
    for l in (2, 3, 4):
        h = jnp.maximum(h @ f32(prm[f"w1{l}"]) + prm[f"b1{l}"], 0.0)         # (B,N,64)
    g = jnp.max(h, axis=1, keepdims=True)                                    # (B,1,64)
    local = h.astype(BF16).astype(F32)                                       # mirror kernel bf16 cast
    idx = query_ball(xp, RADIUS, NSAMPLE)                                    # (B,N,K)
    gxyz = gather(xp, idx) - xp[:, :, None, :]                               # (B,N,K,2)
    gxyz = gxyz.astype(BF16).astype(F32)                                     # mirror packing quantization
    gloc = gather(local, idx)                                                # (B,N,K,64)
    wa_feat = f32(prm["wa_feat"])                                            # (64,30)
    sa_bias = (g @ prm["wa_glob"] + prm["ba"])[:, :, None, :]                # (B,1,1,30)
    h = gloc @ wa_feat + gxyz @ wa_feat[HID:HID + INPUT_DIM] + sa_bias
    h = jnp.maximum(h, 0.0)
    h = jnp.maximum(h @ f32(prm["wb"]) + prm["bb"], 0.0)                     # (B,N,K,60)
    h = jnp.max(h, axis=2)                                                   # (B,N,60)
    for l in (1, 2, 3, 4):
        h = jnp.maximum(h @ f32(prm[f"w4{l}"]) + prm[f"b4{l}"], 0.0)
    return (h @ f32(prm["w5"]) + prm["b5"])[..., :OUT_DIM]


# ============================ parameter init ==================================

def init_params(key):
    keys = iter(jax.random.split(key, 48))
    tobf = lambda a: a.astype(BF16)

    def linear(fi, fo):
        w = jax.random.normal(next(keys), (fi, fo), F32) * np.sqrt(2.0 / fi)
        b = jax.random.uniform(next(keys), (fo,), F32,
                               -1.0 / np.sqrt(fi), 1.0 / np.sqrt(fi))
        return w, b

    def bn(c):
        gamma = 1.0 + 0.1 * jax.random.normal(next(keys), (c,), F32)
        beta = 0.1 * jax.random.normal(next(keys), (c,), F32)
        scale = gamma / jnp.sqrt(1.0 + BN_EPS)    # eval BN, running_var = 1
        shift = beta                              # running_mean = 0
        return scale, shift

    def fused(fi, fo):
        # Linear(fi, fo) + BatchNorm(fo) folded into a single affine (w, b).
        w, b = linear(fi, fo)
        s, sh = bn(fo)
        return w * s[None, :], ((b * s) + sh)[None, :]

    p = {}
    # fc_1_1 = MLP_stacked(42, [20, 40, 80, 60]); layer 1 split over embedding blocks.
    w, b = fused(EMB_DIM, MLP_UNITS[0])
    p["w1x"] = tobf(w[:INPUT_DIM])                                                   # (2, 20)
    p["w1s"] = tobf(w[INPUT_DIM:INPUT_DIM + INPUT_DIM * N_FREQS]
                    .reshape(INPUT_DIM, N_FREQS, MLP_UNITS[0]))                      # (2, 10, 20)
    p["w1c"] = tobf(w[INPUT_DIM + INPUT_DIM * N_FREQS:]
                    .reshape(INPUT_DIM, N_FREQS, MLP_UNITS[0]))                      # (2, 10, 20)
    p["b11"] = b
    for li, (fi, fo) in enumerate(zip(MLP_UNITS[:-1], MLP_UNITS[1:]), start=2):
        w, b = fused(fi, fo)
        if fo == HID:                                          # last layer zero-padded 60 -> 64
            w = jnp.pad(w, ((0, 0), (0, HID_PAD - HID)))
            b = jnp.pad(b, ((0, 0), (0, HID_PAD - HID)))
        p[f"w1{li}"] = tobf(w)
        p[f"b1{li}"] = b

    # fc_3 SA conv1 (122 -> 30); grouped channel order [rel-xyz(2), local(60), global(60)].
    wa, ba = fused(SA_IN, SA_MLP[0])
    wa_xyz = wa[:INPUT_DIM]
    wa_loc = wa[INPUT_DIM:INPUT_DIM + HID]
    wa_glob = wa[INPUT_DIM + HID:]
    wa_feat = jnp.zeros((HID_PAD, SA_MLP[0]), F32)
    wa_feat = wa_feat.at[:HID].set(wa_loc)
    wa_feat = wa_feat.at[HID:HID + INPUT_DIM].set(wa_xyz)      # rel-xyz rows packed into pad lanes
    p["wa_feat"] = tobf(wa_feat)                               # (64, 30) bf16
    p["wa_glob"] = jnp.pad(wa_glob, ((0, HID_PAD - HID), (0, 0)))   # (64, 30) f32 (XLA-side fold)
    p["ba"] = ba
    w, b = fused(SA_MLP[0], SA_MLP[1])                         # SA conv2 (30 -> 60)
    p["wb"], p["bb"] = tobf(w), b

    # fc_4 = MLP_stacked(60, [20, 40, 80, 60])
    dims = (HID,) + MLP_UNITS
    for li in range(4):
        w, b = fused(dims[li], dims[li + 1])
        p[f"w4{li + 1}"], p[f"b4{li + 1}"] = tobf(w), b

    # fc_5 = Linear(60, 2), output zero-padded to a 128-lane slab.
    w5, b5 = linear(HID, OUT_DIM)
    p["w5"] = tobf(jnp.pad(w5, ((0, 0), (0, OUT_PAD - OUT_DIM))))
    p["b5"] = jnp.pad(b5[None, :], ((0, 0), (0, OUT_PAD - OUT_DIM)))
    return p


if __name__ == "__main__":
    key = jax.random.PRNGKey(0)
    kx, kp = jax.random.split(key)
    B, N = 2, 16
    x = jax.random.normal(kx, (B, N, INPUT_DIM), dtype=jnp.float32)
    params = init_params(kp)

    fwd = jax.jit(pointnetpp_forward)
    out = jax.block_until_ready(fwd(x, params))

    assert out.shape == (B, N, OUT_DIM), out.shape
    assert bool(jnp.all(jnp.isfinite(out)))
    ref = forward_ref(x, params)
    # Loose tolerance: kernel path uses bf16 operands / bf16 activations+output
    # (single-pass MXU) vs the f32 reference.
    np.testing.assert_allclose(np.asarray(out), np.asarray(ref), atol=3e-2, rtol=3e-2)
    print("KERNEL_OK")
</pallas_src>

<mosaic_0001>
module attributes {stable_mosaic.version = 11 : i64} {
  func.func @_stage1_kernel(%arg0: i32, %arg1: i32, %arg2: memref<1x16x2xf32, #tpu.memory_space<vmem>>, %arg3: memref<1x10xf32, #tpu.memory_space<vmem>>, %arg4: memref<2x20xbf16, #tpu.memory_space<vmem>>, %arg5: memref<2x10x20xbf16, #tpu.memory_space<vmem>>, %arg6: memref<2x10x20xbf16, #tpu.memory_space<vmem>>, %arg7: memref<1x20xf32, #tpu.memory_space<vmem>>, %arg8: memref<20x40xbf16, #tpu.memory_space<vmem>>, %arg9: memref<1x40xf32, #tpu.memory_space<vmem>>, %arg10: memref<40x80xbf16, #tpu.memory_space<vmem>>, %arg11: memref<1x80xf32, #tpu.memory_space<vmem>>, %arg12: memref<80x64xbf16, #tpu.memory_space<vmem>>, %arg13: memref<1x64xf32, #tpu.memory_space<vmem>>, %arg14: memref<1x16x64xbf16, #tpu.memory_space<vmem>>, %arg15: memref<1x1x64xf32, #tpu.memory_space<vmem>>) attributes {dimension_semantics = [#tpu.dimension_semantics<parallel>, #tpu.dimension_semantics<parallel>], iteration_bounds = array<i64: 1, 2>, scalar_prefetch = 0 : i64, scratch_operands = 0 : i64, tpu.core_type = #tpu.core_type<tc>, window_params = [{transform_indices = @transform_0, window_bounds = array<i64: 1, 16, 2>}, {pipeline_mode = #tpu.pipeline_mode<synchronous>, transform_indices = @transform_1, window_bounds = array<i64: 1, 10>}, {pipeline_mode = #tpu.pipeline_mode<synchronous>, transform_indices = @transform_2, window_bounds = array<i64: 2, 20>}, {pipeline_mode = #tpu.pipeline_mode<synchronous>, transform_indices = @transform_3, window_bounds = array<i64: 2, 10, 20>}, {pipeline_mode = #tpu.pipeline_mode<synchronous>, transform_indices = @transform_4, window_bounds = array<i64: 2, 10, 20>}, {pipeline_mode = #tpu.pipeline_mode<synchronous>, transform_indices = @transform_5, window_bounds = array<i64: 1, 20>}, {pipeline_mode = #tpu.pipeline_mode<synchronous>, transform_indices = @transform_6, window_bounds = array<i64: 20, 40>}, {pipeline_mode = #tpu.pipeline_mode<synchronous>, transform_indices = @transform_7, window_bounds = array<i64: 1, 40>}, {pipeline_mode = #tpu.pipeline_mode<synchronous>, transform_indices = @transform_8, window_bounds = array<i64: 40, 80>}, {pipeline_mode = #tpu.pipeline_mode<synchronous>, transform_indices = @transform_9, window_bounds = array<i64: 1, 80>}, {pipeline_mode = #tpu.pipeline_mode<synchronous>, transform_indices = @transform_10, window_bounds = array<i64: 80, 64>}, {pipeline_mode = #tpu.pipeline_mode<synchronous>, transform_indices = @transform_11, window_bounds = array<i64: 1, 64>}, {transform_indices = @transform_12, window_bounds = array<i64: 1, 16, 64>}, {transform_indices = @transform_13, window_bounds = array<i64: 1, 1, 64>}]} {
    %c0 = arith.constant 0 : index
    %c0_0 = arith.constant 0 : index
    %c0_1 = arith.constant 0 : index
    %0 = vector.load %arg2[%c0, %c0_0, %c0_1] : memref<1x16x2xf32, #tpu.memory_space<vmem>>, vector<1x16x2xf32>
    %1 = vector.shape_cast %0 : vector<1x16x2xf32> to vector<16x2xf32>
    %c0_2 = arith.constant 0 : index
    %c0_3 = arith.constant 0 : index
    %2 = vector.load %arg3[%c0_2, %c0_3] : memref<1x10xf32, #tpu.memory_space<vmem>>, vector<1x10xf32>
    %3 = vector.extract_strided_slice %1 {offsets = [0, 0], sizes = [16, 1], strides = [1, 1]} : vector<16x2xf32> to vector<16x1xf32>
    %4 = vector.broadcast %3 : vector<16x1xf32> to vector<16x10xf32>
    %5 = vector.broadcast %2 : vector<1x10xf32> to vector<16x10xf32>
    %6 = arith.mulf %4, %5 : vector<16x10xf32>
    %7 = vector.extract_strided_slice %1 {offsets = [0, 1], sizes = [16, 1], strides = [1, 1]} : vector<16x2xf32> to vector<16x1xf32>
    %8 = vector.broadcast %7 : vector<16x1xf32> to vector<16x10xf32>
    %9 = vector.broadcast %2 : vector<1x10xf32> to vector<16x10xf32>
    %10 = arith.mulf %8, %9 : vector<16x10xf32>
    %c0_4 = arith.constant 0 : index
    %c0_5 = arith.constant 0 : index
    %11 = vector.load %arg4[%c0_4, %c0_5] : memref<2x20xbf16, #tpu.memory_space<vmem>>, vector<2x20xbf16>
    %12 = arith.extf %11 : vector<2x20xbf16> to vector<2x20xf32>
    %13 = vector.extract_strided_slice %1 {offsets = [0, 0], sizes = [16, 1], strides = [1, 1]} : vector<16x2xf32> to vector<16x1xf32>
    %14 = vector.extract_strided_slice %12 {offsets = [0, 0], sizes = [1, 20], strides = [1, 1]} : vector<2x20xf32> to vector<1x20xf32>
    %15 = vector.broadcast %13 : vector<16x1xf32> to vector<16x20xf32>
    %16 = vector.broadcast %14 : vector<1x20xf32> to vector<16x20xf32>
    %17 = arith.mulf %15, %16 : vector<16x20xf32>
    %18 = vector.extract_strided_slice %1 {offsets = [0, 1], sizes = [16, 1], strides = [1, 1]} : vector<16x2xf32> to vector<16x1xf32>
    %19 = vector.extract_strided_slice %12 {offsets = [1, 0], sizes = [1, 20], strides = [1, 1]} : vector<2x20xf32> to vector<1x20xf32>
    %20 = vector.broadcast %18 : vector<16x1xf32> to vector<16x20xf32>
    %21 = vector.broadcast %19 : vector<1x20xf32> to vector<16x20xf32>
    %22 = arith.mulf %20, %21 : vector<16x20xf32>
    %23 = arith.addf %17, %22 : vector<16x20xf32>
    %24 = math.sin %6 : vector<16x10xf32>
    %25 = arith.truncf %24 : vector<16x10xf32> to vector<16x10xbf16>
    %c0_6 = arith.constant 0 : index
    %c0_7 = arith.constant 0 : index
    %c0_8 = arith.constant 0 : index
    %26 = vector.load %arg5[%c0_6, %c0_7, %c0_8] : memref<2x10x20xbf16, #tpu.memory_space<vmem>>, vector<1x10x20xbf16>
    %27 = vector.shape_cast %26 : vector<1x10x20xbf16> to vector<10x20xbf16>
    %cst = arith.constant dense<0.000000e+00> : vector<16x20xf32>
    %28 = tpu.matmul %25, %27, %cst {dimension_numbers = #tpu.dot_dimension_numbers<[1], [0], [0], [1], [0, 0, 1, 1], [], []>} : vector<16x10xbf16>, vector<10x20xbf16>, vector<16x20xf32> -> vector<16x20xf32>
    %29 = arith.addf %23, %28 : vector<16x20xf32>
    %30 = math.sin %10 : vector<16x10xf32>
    %31 = arith.truncf %30 : vector<16x10xf32> to vector<16x10xbf16>
    %c1 = arith.constant 1 : index
    %c0_9 = arith.constant 0 : index
    %c0_10 = arith.constant 0 : index
    %32 = vector.load %arg5[%c1, %c0_9, %c0_10] : memref<2x10x20xbf16, #tpu.memory_space<vmem>>, vector<1x10x20xbf16>
    %33 = vector.shape_cast %32 : vector<1x10x20xbf16> to vector<10x20xbf16>
    %cst_11 = arith.constant dense<0.000000e+00> : vector<16x20xf32>
    %34 = tpu.matmul %31, %33, %cst_11 {dimension_numbers = #tpu.dot_dimension_numbers<[1], [0], [0], [1], [0, 0, 1, 1], [], []>} : vector<16x10xbf16>, vector<10x20xbf16>, vector<16x20xf32> -> vector<16x20xf32>
    %35 = arith.addf %29, %34 : vector<16x20xf32>
    %36 = math.cos %6 : vector<16x10xf32>
    %37 = arith.truncf %36 : vector<16x10xf32> to vector<16x10xbf16>
    %c0_12 = arith.constant 0 : index
    %c0_13 = arith.constant 0 : index
    %c0_14 = arith.constant 0 : index
    %38 = vector.load %arg6[%c0_12, %c0_13, %c0_14] : memref<2x10x20xbf16, #tpu.memory_space<vmem>>, vector<1x10x20xbf16>
    %39 = vector.shape_cast %38 : vector<1x10x20xbf16> to vector<10x20xbf16>
    %cst_15 = arith.constant dense<0.000000e+00> : vector<16x20xf32>
    %40 = tpu.matmul %37, %39, %cst_15 {dimension_numbers = #tpu.dot_dimension_numbers<[1], [0], [0], [1], [0, 0, 1, 1], [], []>} : vector<16x10xbf16>, vector<10x20xbf16>, vector<16x20xf32> -> vector<16x20xf32>
    %41 = arith.addf %35, %40 : vector<16x20xf32>
    %42 = math.cos %10 : vector<16x10xf32>
    %43 = arith.truncf %42 : vector<16x10xf32> to vector<16x10xbf16>
    %c1_16 = arith.constant 1 : index
    %c0_17 = arith.constant 0 : index
    %c0_18 = arith.constant 0 : index
    %44 = vector.load %arg6[%c1_16, %c0_17, %c0_18] : memref<2x10x20xbf16, #tpu.memory_space<vmem>>, vector<1x10x20xbf16>
    %45 = vector.shape_cast %44 : vector<1x10x20xbf16> to vector<10x20xbf16>
    %cst_19 = arith.constant dense<0.000000e+00> : vector<16x20xf32>
    %46 = tpu.matmul %43, %45, %cst_19 {dimension_numbers = #tpu.dot_dimension_numbers<[1], [0], [0], [1], [0, 0, 1, 1], [], []>} : vector<16x10xbf16>, vector<10x20xbf16>, vector<16x20xf32> -> vector<16x20xf32>
    %47 = arith.addf %41, %46 : vector<16x20xf32>
    %c0_20 = arith.constant 0 : index
    %c0_21 = arith.constant 0 : index
    %48 = vector.load %arg7[%c0_20, %c0_21] : memref<1x20xf32, #tpu.memory_space<vmem>>, vector<1x20xf32>
    %49 = vector.broadcast %48 : vector<1x20xf32> to vector<16x20xf32>
    %50 = arith.addf %47, %49 : vector<16x20xf32>
    %cst_22 = arith.constant 0.000000e+00 : f32
    %51 = vector.broadcast %cst_22 : f32 to vector<16x20xf32>
    %52 = arith.maximumf %50, %51 : vector<16x20xf32>
    %53 = arith.truncf %52 : vector<16x20xf32> to vector<16x20xbf16>
    %c0_23 = arith.constant 0 : index
    %c0_24 = arith.constant 0 : index
    %54 = vector.load %arg8[%c0_23, %c0_24] : memref<20x40xbf16, #tpu.memory_space<vmem>>, vector<20x40xbf16>
    %cst_25 = arith.constant dense<0.000000e+00> : vector<16x40xf32>
    %55 = tpu.matmul %53, %54, %cst_25 {dimension_numbers = #tpu.dot_dimension_numbers<[1], [0], [0], [1], [0, 0, 1, 1], [], []>} : vector<16x20xbf16>, vector<20x40xbf16>, vector<16x40xf32> -> vector<16x40xf32>
    %c0_26 = arith.constant 0 : index
    %c0_27 = arith.constant 0 : index
    %56 = vector.load %arg9[%c0_26, %c0_27] : memref<1x40xf32, #tpu.memory_space<vmem>>, vector<1x40xf32>
    %57 = vector.broadcast %56 : vector<1x40xf32> to vector<16x40xf32>
    %58 = arith.addf %55, %57 : vector<16x40xf32>
    %cst_28 = arith.constant 0.000000e+00 : f32
    %59 = vector.broadcast %cst_28 : f32 to vector<16x40xf32>
    %60 = arith.maximumf %58, %59 : vector<16x40xf32>
    %61 = arith.truncf %60 : vector<16x40xf32> to vector<16x40xbf16>
    %c0_29 = arith.constant 0 : index
    %c0_30 = arith.constant 0 : index
    %62 = vector.load %arg10[%c0_29, %c0_30] : memref<40x80xbf16, #tpu.memory_space<vmem>>, vector<40x80xbf16>
    %cst_31 = arith.constant dense<0.000000e+00> : vector<16x80xf32>
    %63 = tpu.matmul %61, %62, %cst_31 {dimension_numbers = #tpu.dot_dimension_numbers<[1], [0], [0], [1], [0, 0, 1, 1], [], []>} : vector<16x40xbf16>, vector<40x80xbf16>, vector<16x80xf32> -> vector<16x80xf32>
    %c0_32 = arith.constant 0 : index
    %c0_33 = arith.constant 0 : index
    %64 = vector.load %arg11[%c0_32, %c0_33] : memref<1x80xf32, #tpu.memory_space<vmem>>, vector<1x80xf32>
    %65 = vector.broadcast %64 : vector<1x80xf32> to vector<16x80xf32>
    %66 = arith.addf %63, %65 : vector<16x80xf32>
    %cst_34 = arith.constant 0.000000e+00 : f32
    %67 = vector.broadcast %cst_34 : f32 to vector<16x80xf32>
    %68 = arith.maximumf %66, %67 : vector<16x80xf32>
    %69 = arith.truncf %68 : vector<16x80xf32> to vector<16x80xbf16>
    %c0_35 = arith.constant 0 : index
    %c0_36 = arith.constant 0 : index
    %70 = vector.load %arg12[%c0_35, %c0_36] : memref<80x64xbf16, #tpu.memory_space<vmem>>, vector<80x64xbf16>
    %cst_37 = arith.constant dense<0.000000e+00> : vector<16x64xf32>
    %71 = tpu.matmul %69, %70, %cst_37 {dimension_numbers = #tpu.dot_dimension_numbers<[1], [0], [0], [1], [0, 0, 1, 1], [], []>} : vector<16x80xbf16>, vector<80x64xbf16>, vector<16x64xf32> -> vector<16x64xf32>
    %c0_38 = arith.constant 0 : index
    %c0_39 = arith.constant 0 : index
    %72 = vector.load %arg13[%c0_38, %c0_39] : memref<1x64xf32, #tpu.memory_space<vmem>>, vector<1x64xf32>
    %73 = vector.broadcast %72 : vector<1x64xf32> to vector<16x64xf32>
    %74 = arith.addf %71, %73 : vector<16x64xf32>
    %cst_40 = arith.constant 0.000000e+00 : f32
    %75 = vector.broadcast %cst_40 : f32 to vector<16x64xf32>
    %76 = arith.maximumf %74, %75 : vector<16x64xf32>
    %77 = arith.truncf %76 : vector<16x64xf32> to vector<16x64xbf16>
    %c0_41 = arith.constant 0 : index
    %c0_42 = arith.constant 0 : index
    %c0_43 = arith.constant 0 : index
    %78 = vector.load %arg14[%c0_41, %c0_42, %c0_43] : memref<1x16x64xbf16, #tpu.memory_space<vmem>>, vector<1x16x64xbf16>
    %79 = vector.shape_cast %78 : vector<1x16x64xbf16> to vector<16x64xbf16>
    %80 = vector.shape_cast %77 : vector<16x64xbf16> to vector<1x16x64xbf16>
    tpu.vector_store %arg14[%c0_41, %c0_42, %c0_43], %80 {strides = array<i32>} : memref<1x16x64xbf16, #tpu.memory_space<vmem>>, vector<1x16x64xbf16>,
    %cst_44 = arith.constant dense<0xFF800000> : vector<64xf32>
    %81 = vector.multi_reduction <maximumf>, %76, %cst_44 [0] : vector<16x64xf32> to vector<64xf32>
    %82 = vector.shape_cast %81 : vector<64xf32> to vector<1x64xf32>
    %c0_45 = arith.constant 0 : index
    %c0_46 = arith.constant 0 : index
    %c0_47 = arith.constant 0 : index
    %83 = vector.load %arg15[%c0_45, %c0_46, %c0_47] : memref<1x1x64xf32, #tpu.memory_space<vmem>>, vector<1x1x64xf32>
    %84 = vector.shape_cast %83 : vector<1x1x64xf32> to vector<1x64xf32>
    %85 = vector.shape_cast %82 : vector<1x64xf32> to vector<1x1x64xf32>
    tpu.vector_store %arg15[%c0_45, %c0_46, %c0_47], %85 {strides = array<i32>} : memref<1x1x64xf32, #tpu.memory_space<vmem>>, vector<1x1x64xf32>,
    return
  }
  func.func @transform_0(%arg0: i32, %arg1: i32) -> (i32, i32, i32) {
    %c0_i32 = arith.constant 0 : i32
    %c0_i32_0 = arith.constant 0 : i32
    return %arg1, %arg0, %c0_i32 : i32, i32, i32
  }
  func.func @transform_1(%arg0: i32, %arg1: i32) -> (i32, i32) {
    %c0_i32 = arith.constant 0 : i32
    %c0_i32_0 = arith.constant 0 : i32
    %c0_i32_1 = arith.constant 0 : i32
    return %c0_i32, %c0_i32_0 : i32, i32
  }
  func.func @transform_2(%arg0: i32, %arg1: i32) -> (i32, i32) {
    %c0_i32 = arith.constant 0 : i32
    %c0_i32_0 = arith.constant 0 : i32
    %c0_i32_1 = arith.constant 0 : i32
    return %c0_i32, %c0_i32_0 : i32, i32
  }
  func.func @transform_3(%arg0: i32, %arg1: i32) -> (i32, i32, i32) {
    %c0_i32 = arith.constant 0 : i32
    %c0_i32_0 = arith.constant 0 : i32
    %c0_i32_1 = arith.constant 0 : i32
    %c0_i32_2 = arith.constant 0 : i32
    return %c0_i32, %c0_i32_0, %c0_i32_1 : i32, i32, i32
  }
  func.func @transform_4(%arg0: i32, %arg1: i32) -> (i32, i32, i32) {
    %c0_i32 = arith.constant 0 : i32
    %c0_i32_0 = arith.constant 0 : i32
    %c0_i32_1 = arith.constant 0 : i32
    %c0_i32_2 = arith.constant 0 : i32
    return %c0_i32, %c0_i32_0, %c0_i32_1 : i32, i32, i32
  }
  func.func @transform_5(%arg0: i32, %arg1: i32) -> (i32, i32) {
    %c0_i32 = arith.constant 0 : i32
    %c0_i32_0 = arith.constant 0 : i32
    %c0_i32_1 = arith.constant 0 : i32
    return %c0_i32, %c0_i32_0 : i32, i32
  }
  func.func @transform_6(%arg0: i32, %arg1: i32) -> (i32, i32) {
    %c0_i32 = arith.constant 0 : i32
    %c0_i32_0 = arith.constant 0 : i32
    %c0_i32_1 = arith.constant 0 : i32
    return %c0_i32, %c0_i32_0 : i32, i32
  }
  func.func @transform_7(%arg0: i32, %arg1: i32) -> (i32, i32) {
    %c0_i32 = arith.constant 0 : i32
    %c0_i32_0 = arith.constant 0 : i32
    %c0_i32_1 = arith.constant 0 : i32
    return %c0_i32, %c0_i32_0 : i32, i32
  }
  func.func @transform_8(%arg0: i32, %arg1: i32) -> (i32, i32) {
    %c0_i32 = arith.constant 0 : i32
    %c0_i32_0 = arith.constant 0 : i32
    %c0_i32_1 = arith.constant 0 : i32
    return %c0_i32, %c0_i32_0 : i32, i32
  }
  func.func @transform_9(%arg0: i32, %arg1: i32) -> (i32, i32) {
    %c0_i32 = arith.constant 0 : i32
    %c0_i32_0 = arith.constant 0 : i32
    %c0_i32_1 = arith.constant 0 : i32
    return %c0_i32, %c0_i32_0 : i32, i32
  }
  func.func @transform_10(%arg0: i32, %arg1: i32) -> (i32, i32) {
    %c0_i32 = arith.constant 0 : i32
    %c0_i32_0 = arith.constant 0 : i32
    %c0_i32_1 = arith.constant 0 : i32
    return %c0_i32, %c0_i32_0 : i32, i32
  }
  func.func @transform_11(%arg0: i32, %arg1: i32) -> (i32, i32) {
    %c0_i32 = arith.constant 0 : i32
    %c0_i32_0 = arith.constant 0 : i32
    %c0_i32_1 = arith.constant 0 : i32
    return %c0_i32, %c0_i32_0 : i32, i32
  }
  func.func @transform_12(%arg0: i32, %arg1: i32) -> (i32, i32, i32) {
    %c0_i32 = arith.constant 0 : i32
    %c0_i32_0 = arith.constant 0 : i32
    return %arg1, %arg0, %c0_i32 : i32, i32, i32
  }
  func.func @transform_13(%arg0: i32, %arg1: i32) -> (i32, i32, i32) {
    %c0_i32 = arith.constant 0 : i32
    %c0_i32_0 = arith.constant 0 : i32
    return %arg1, %arg0, %c0_i32 : i32, i32, i32
  }
}

module attributes {stable_mosaic.version = 11 : i64} {
  func.func @_stage2_kernel(%arg0: i32, %arg1: i32, %arg2: memref<1x4x16x64xbf16, #tpu.memory_space<vmem>>, %arg3: memref<1x1x30xf32, #tpu.memory_space<vmem>>, %arg4: memref<64x30xbf16, #tpu.memory_space<vmem>>, %arg5: memref<30x60xbf16, #tpu.memory_space<vmem>>, %arg6: memref<1x60xf32, #tpu.memory_space<vmem>>, %arg7: memref<60x20xbf16, #tpu.memory_space<vmem>>, %arg8: memref<1x20xf32, #tpu.memory_space<vmem>>, %arg9: memref<20x40xbf16, #tpu.memory_space<vmem>>, %arg10: memref<1x40xf32, #tpu.memory_space<vmem>>, %arg11: memref<40x80xbf16, #tpu.memory_space<vmem>>, %arg12: memref<1x80xf32, #tpu.memory_space<vmem>>, %arg13: memref<80x60xbf16, #tpu.memory_space<vmem>>, %arg14: memref<1x60xf32, #tpu.memory_space<vmem>>, %arg15: memref<60x128xbf16, #tpu.memory_space<vmem>>, %arg16: memref<1x128xf32, #tpu.memory_space<vmem>>, %arg17: memref<1x16x128xbf16, #tpu.memory_space<vmem>>) attributes {dimension_semantics = [#tpu.dimension_semantics<parallel>, #tpu.dimension_semantics<parallel>], iteration_bounds = array<i64: 1, 2>, scalar_prefetch = 0 : i64, scratch_operands = 0 : i64, tpu.core_type = #tpu.core_type<tc>, window_params = [{transform_indices = @transform_0, window_bounds = array<i64: 1, 4, 16, 64>}, {transform_indices = @transform_1, window_bounds = array<i64: 1, 1, 30>}, {pipeline_mode = #tpu.pipeline_mode<synchronous>, transform_indices = @transform_2, window_bounds = array<i64: 64, 30>}, {pipeline_mode = #tpu.pipeline_mode<synchronous>, transform_indices = @transform_3, window_bounds = array<i64: 30, 60>}, {pipeline_mode = #tpu.pipeline_mode<synchronous>, transform_indices = @transform_4, window_bounds = array<i64: 1, 60>}, {pipeline_mode = #tpu.pipeline_mode<synchronous>, transform_indices = @transform_5, window_bounds = array<i64: 60, 20>}, {pipeline_mode = #tpu.pipeline_mode<synchronous>, transform_indices = @transform_6, window_bounds = array<i64: 1, 20>}, {pipeline_mode = #tpu.pipeline_mode<synchronous>, transform_indices = @transform_7, window_bounds = array<i64: 20, 40>}, {pipeline_mode = #tpu.pipeline_mode<synchronous>, transform_indices = @transform_8, window_bounds = array<i64: 1, 40>}, {pipeline_mode = #tpu.pipeline_mode<synchronous>, transform_indices = @transform_9, window_bounds = array<i64: 40, 80>}, {pipeline_mode = #tpu.pipeline_mode<synchronous>, transform_indices = @transform_10, window_bounds = array<i64: 1, 80>}, {pipeline_mode = #tpu.pipeline_mode<synchronous>, transform_indices = @transform_11, window_bounds = array<i64: 80, 60>}, {pipeline_mode = #tpu.pipeline_mode<synchronous>, transform_indices = @transform_12, window_bounds = array<i64: 1, 60>}, {pipeline_mode = #tpu.pipeline_mode<synchronous>, transform_indices = @transform_13, window_bounds = array<i64: 60, 128>}, {pipeline_mode = #tpu.pipeline_mode<synchronous>, transform_indices = @transform_14, window_bounds = array<i64: 1, 128>}, {transform_indices = @transform_15, window_bounds = array<i64: 1, 16, 128>}]} {
    %c0 = arith.constant 0 : index
    %c0_0 = arith.constant 0 : index
    %c0_1 = arith.constant 0 : index
    %c0_2 = arith.constant 0 : index
    %0 = vector.load %arg2[%c0, %c0_0, %c0_1, %c0_2] : memref<1x4x16x64xbf16, #tpu.memory_space<vmem>>, vector<1x4x16x64xbf16>
    %1 = vector.shape_cast %0 : vector<1x4x16x64xbf16> to vector<4x16x64xbf16>
    %2 = vector.shape_cast %1 : vector<4x16x64xbf16> to vector<64x64xbf16>
    %c0_3 = arith.constant 0 : index
    %c0_4 = arith.constant 0 : index
    %3 = vector.load %arg4[%c0_3, %c0_4] : memref<64x30xbf16, #tpu.memory_space<vmem>>, vector<64x30xbf16>
    %cst = arith.constant dense<0.000000e+00> : vector<64x30xf32>
    %4 = tpu.matmul %2, %3, %cst {dimension_numbers = #tpu.dot_dimension_numbers<[1], [0], [0], [1], [0, 0, 1, 1], [], []>} : vector<64x64xbf16>, vector<64x30xbf16>, vector<64x30xf32> -> vector<64x30xf32>
    %c0_5 = arith.constant 0 : index
    %c0_6 = arith.constant 0 : index
    %c0_7 = arith.constant 0 : index
    %5 = vector.load %arg3[%c0_5, %c0_6, %c0_7] : memref<1x1x30xf32, #tpu.memory_space<vmem>>, vector<1x1x30xf32>
    %6 = vector.shape_cast %5 : vector<1x1x30xf32> to vector<1x30xf32>
    %7 = vector.broadcast %6 : vector<1x30xf32> to vector<64x30xf32>
    %8 = arith.addf %4, %7 : vector<64x30xf32>
    %cst_8 = arith.constant 0.000000e+00 : f32
    %9 = vector.broadcast %cst_8 : f32 to vector<64x30xf32>
    %10 = arith.maximumf %8, %9 : vector<64x30xf32>
    %11 = arith.truncf %10 : vector<64x30xf32> to vector<64x30xbf16>
    %c0_9 = arith.constant 0 : index
    %c0_10 = arith.constant 0 : index
    %12 = vector.load %arg5[%c0_9, %c0_10] : memref<30x60xbf16, #tpu.memory_space<vmem>>, vector<30x60xbf16>
    %cst_11 = arith.constant dense<0.000000e+00> : vector<64x60xf32>
    %13 = tpu.matmul %11, %12, %cst_11 {dimension_numbers = #tpu.dot_dimension_numbers<[1], [0], [0], [1], [0, 0, 1, 1], [], []>} : vector<64x30xbf16>, vector<30x60xbf16>, vector<64x60xf32> -> vector<64x60xf32>
    %c0_12 = arith.constant 0 : index
    %c0_13 = arith.constant 0 : index
    %14 = vector.load %arg6[%c0_12, %c0_13] : memref<1x60xf32, #tpu.memory_space<vmem>>, vector<1x60xf32>
    %15 = vector.broadcast %14 : vector<1x60xf32> to vector<64x60xf32>
    %16 = arith.addf %13, %15 : vector<64x60xf32>
    %cst_14 = arith.constant 0.000000e+00 : f32
    %17 = vector.broadcast %cst_14 : f32 to vector<64x60xf32>
    %18 = arith.maximumf %16, %17 : vector<64x60xf32>
    %19 = vector.shape_cast %18 : vector<64x60xf32> to vector<4x16x60xf32>
    %cst_15 = arith.constant dense<0xFF800000> : vector<16x60xf32>
    %20 = vector.multi_reduction <maximumf>, %19, %cst_15 [0] : vector<4x16x60xf32> to vector<16x60xf32>
    %21 = arith.truncf %20 : vector<16x60xf32> to vector<16x60xbf16>
    %c0_16 = arith.constant 0 : index
    %c0_17 = arith.constant 0 : index
    %22 = vector.load %arg7[%c0_16, %c0_17] : memref<60x20xbf16, #tpu.memory_space<vmem>>, vector<60x20xbf16>
    %cst_18 = arith.constant dense<0.000000e+00> : vector<16x20xf32>
    %23 = tpu.matmul %21, %22, %cst_18 {dimension_numbers = #tpu.dot_dimension_numbers<[1], [0], [0], [1], [0, 0, 1, 1], [], []>} : vector<16x60xbf16>, vector<60x20xbf16>, vector<16x20xf32> -> vector<16x20xf32>
    %c0_19 = arith.constant 0 : index
    %c0_20 = arith.constant 0 : index
    %24 = vector.load %arg8[%c0_19, %c0_20] : memref<1x20xf32, #tpu.memory_space<vmem>>, vector<1x20xf32>
    %25 = vector.broadcast %24 : vector<1x20xf32> to vector<16x20xf32>
    %26 = arith.addf %23, %25 : vector<16x20xf32>
    %cst_21 = arith.constant 0.000000e+00 : f32
    %27 = vector.broadcast %cst_21 : f32 to vector<16x20xf32>
    %28 = arith.maximumf %26, %27 : vector<16x20xf32>
    %29 = arith.truncf %28 : vector<16x20xf32> to vector<16x20xbf16>
    %c0_22 = arith.constant 0 : index
    %c0_23 = arith.constant 0 : index
    %30 = vector.load %arg9[%c0_22, %c0_23] : memref<20x40xbf16, #tpu.memory_space<vmem>>, vector<20x40xbf16>
    %cst_24 = arith.constant dense<0.000000e+00> : vector<16x40xf32>
    %31 = tpu.matmul %29, %30, %cst_24 {dimension_numbers = #tpu.dot_dimension_numbers<[1], [0], [0], [1], [0, 0, 1, 1], [], []>} : vector<16x20xbf16>, vector<20x40xbf16>, vector<16x40xf32> -> vector<16x40xf32>
    %c0_25 = arith.constant 0 : index
    %c0_26 = arith.constant 0 : index
    %32 = vector.load %arg10[%c0_25, %c0_26] : memref<1x40xf32, #tpu.memory_space<vmem>>, vector<1x40xf32>
    %33 = vector.broadcast %32 : vector<1x40xf32> to vector<16x40xf32>
    %34 = arith.addf %31, %33 : vector<16x40xf32>
    %cst_27 = arith.constant 0.000000e+00 : f32
    %35 = vector.broadcast %cst_27 : f32 to vector<16x40xf32>
    %36 = arith.maximumf %34, %35 : vector<16x40xf32>
    %37 = arith.truncf %36 : vector<16x40xf32> to vector<16x40xbf16>
    %c0_28 = arith.constant 0 : index
    %c0_29 = arith.constant 0 : index
    %38 = vector.load %arg11[%c0_28, %c0_29] : memref<40x80xbf16, #tpu.memory_space<vmem>>, vector<40x80xbf16>
    %cst_30 = arith.constant dense<0.000000e+00> : vector<16x80xf32>
    %39 = tpu.matmul %37, %38, %cst_30 {dimension_numbers = #tpu.dot_dimension_numbers<[1], [0], [0], [1], [0, 0, 1, 1], [], []>} : vector<16x40xbf16>, vector<40x80xbf16>, vector<16x80xf32> -> vector<16x80xf32>
    %c0_31 = arith.constant 0 : index
    %c0_32 = arith.constant 0 : index
    %40 = vector.load %arg12[%c0_31, %c0_32] : memref<1x80xf32, #tpu.memory_space<vmem>>, vector<1x80xf32>
    %41 = vector.broadcast %40 : vector<1x80xf32> to vector<16x80xf32>
    %42 = arith.addf %39, %41 : vector<16x80xf32>
    %cst_33 = arith.constant 0.000000e+00 : f32
    %43 = vector.broadcast %cst_33 : f32 to vector<16x80xf32>
    %44 = arith.maximumf %42, %43 : vector<16x80xf32>
    %45 = arith.truncf %44 : vector<16x80xf32> to vector<16x80xbf16>
    %c0_34 = arith.constant 0 : index
    %c0_35 = arith.constant 0 : index
    %46 = vector.load %arg13[%c0_34, %c0_35] : memref<80x60xbf16, #tpu.memory_space<vmem>>, vector<80x60xbf16>
    %cst_36 = arith.constant dense<0.000000e+00> : vector<16x60xf32>
    %47 = tpu.matmul %45, %46, %cst_36 {dimension_numbers = #tpu.dot_dimension_numbers<[1], [0], [0], [1], [0, 0, 1, 1], [], []>} : vector<16x80xbf16>, vector<80x60xbf16>, vector<16x60xf32> -> vector<16x60xf32>
    %c0_37 = arith.constant 0 : index
    %c0_38 = arith.constant 0 : index
    %48 = vector.load %arg14[%c0_37, %c0_38] : memref<1x60xf32, #tpu.memory_space<vmem>>, vector<1x60xf32>
    %49 = vector.broadcast %48 : vector<1x60xf32> to vector<16x60xf32>
    %50 = arith.addf %47, %49 : vector<16x60xf32>
    %cst_39 = arith.constant 0.000000e+00 : f32
    %51 = vector.broadcast %cst_39 : f32 to vector<16x60xf32>
    %52 = arith.maximumf %50, %51 : vector<16x60xf32>
    %53 = arith.truncf %52 : vector<16x60xf32> to vector<16x60xbf16>
    %c0_40 = arith.constant 0 : index
    %c0_41 = arith.constant 0 : index
    %54 = vector.load %arg15[%c0_40, %c0_41] : memref<60x128xbf16, #tpu.memory_space<vmem>>, vector<60x128xbf16>
    %cst_42 = arith.constant dense<0.000000e+00> : vector<16x128xf32>
    %55 = tpu.matmul %53, %54, %cst_42 {dimension_numbers = #tpu.dot_dimension_numbers<[1], [0], [0], [1], [0, 0, 1, 1], [], []>} : vector<16x60xbf16>, vector<60x128xbf16>, vector<16x128xf32> -> vector<16x128xf32>
    %c0_43 = arith.constant 0 : index
    %c0_44 = arith.constant 0 : index
    %56 = vector.load %arg16[%c0_43, %c0_44] : memref<1x128xf32, #tpu.memory_space<vmem>>, vector<1x128xf32>
    %57 = vector.broadcast %56 : vector<1x128xf32> to vector<16x128xf32>
    %58 = arith.addf %55, %57 : vector<16x128xf32>
    %59 = arith.truncf %58 : vector<16x128xf32> to vector<16x128xbf16>
    %c0_45 = arith.constant 0 : index
    %c0_46 = arith.constant 0 : index
    %c0_47 = arith.constant 0 : index
    %60 = vector.load %arg17[%c0_45, %c0_46, %c0_47] : memref<1x16x128xbf16, #tpu.memory_space<vmem>>, vector<1x16x128xbf16>
    %61 = vector.shape_cast %60 : vector<1x16x128xbf16> to vector<16x128xbf16>
    %62 = vector.shape_cast %59 : vector<16x128xbf16> to vector<1x16x128xbf16>
    tpu.vector_store %arg17[%c0_45, %c0_46, %c0_47], %62 {strides = array<i32>} : memref<1x16x128xbf16, #tpu.memory_space<vmem>>, vector<1x16x128xbf16>,
    return
  }
  func.func @transform_0(%arg0: i32, %arg1: i32) -> (i32, i32, i32, i32) {
    %c0_i32 = arith.constant 0 : i32
    %c0_i32_0 = arith.constant 0 : i32
    %c0_i32_1 = arith.constant 0 : i32
    return %arg1, %c0_i32, %arg0, %c0_i32_0 : i32, i32, i32, i32
  }
  func.func @transform_1(%arg0: i32, %arg1: i32) -> (i32, i32, i32) {
    %c0_i32 = arith.constant 0 : i32
    %c0_i32_0 = arith.constant 0 : i32
    %c0_i32_1 = arith.constant 0 : i32
    return %arg1, %c0_i32, %c0_i32_0 : i32, i32, i32
  }
  func.func @transform_2(%arg0: i32, %arg1: i32) -> (i32, i32) {
    %c0_i32 = arith.constant 0 : i32
    %c0_i32_0 = arith.constant 0 : i32
    %c0_i32_1 = arith.constant 0 : i32
    return %c0_i32, %c0_i32_0 : i32, i32
  }
  func.func @transform_3(%arg0: i32, %arg1: i32) -> (i32, i32) {
    %c0_i32 = arith.constant 0 : i32
    %c0_i32_0 = arith.constant 0 : i32
    %c0_i32_1 = arith.constant 0 : i32
    return %c0_i32, %c0_i32_0 : i32, i32
  }
  func.func @transform_4(%arg0: i32, %arg1: i32) -> (i32, i32) {
    %c0_i32 = arith.constant 0 : i32
    %c0_i32_0 = arith.constant 0 : i32
    %c0_i32_1 = arith.constant 0 : i32
    return %c0_i32, %c0_i32_0 : i32, i32
  }
  func.func @transform_5(%arg0: i32, %arg1: i32) -> (i32, i32) {
    %c0_i32 = arith.constant 0 : i32
    %c0_i32_0 = arith.constant 0 : i32
    %c0_i32_1 = arith.constant 0 : i32
    return %c0_i32, %c0_i32_0 : i32, i32
  }
  func.func @transform_6(%arg0: i32, %arg1: i32) -> (i32, i32) {
    %c0_i32 = arith.constant 0 : i32
    %c0_i32_0 = arith.constant 0 : i32
    %c0_i32_1 = arith.constant 0 : i32
    return %c0_i32, %c0_i32_0 : i32, i32
  }
  func.func @transform_7(%arg0: i32, %arg1: i32) -> (i32, i32) {
    %c0_i32 = arith.constant 0 : i32
    %c0_i32_0 = arith.constant 0 : i32
    %c0_i32_1 = arith.constant 0 : i32
    return %c0_i32, %c0_i32_0 : i32, i32
  }
  func.func @transform_8(%arg0: i32, %arg1: i32) -> (i32, i32) {
    %c0_i32 = arith.constant 0 : i32
    %c0_i32_0 = arith.constant 0 : i32
    %c0_i32_1 = arith.constant 0 : i32
    return %c0_i32, %c0_i32_0 : i32, i32
  }
  func.func @transform_9(%arg0: i32, %arg1: i32) -> (i32, i32) {
    %c0_i32 = arith.constant 0 : i32
    %c0_i32_0 = arith.constant 0 : i32
    %c0_i32_1 = arith.constant 0 : i32
    return %c0_i32, %c0_i32_0 : i32, i32
  }
  func.func @transform_10(%arg0: i32, %arg1: i32) -> (i32, i32) {
    %c0_i32 = arith.constant 0 : i32
    %c0_i32_0 = arith.constant 0 : i32
    %c0_i32_1 = arith.constant 0 : i32
    return %c0_i32, %c0_i32_0 : i32, i32
  }
  func.func @transform_11(%arg0: i32, %arg1: i32) -> (i32, i32) {
    %c0_i32 = arith.constant 0 : i32
    %c0_i32_0 = arith.constant 0 : i32
    %c0_i32_1 = arith.constant 0 : i32
    return %c0_i32, %c0_i32_0 : i32, i32
  }
  func.func @transform_12(%arg0: i32, %arg1: i32) -> (i32, i32) {
    %c0_i32 = arith.constant 0 : i32
    %c0_i32_0 = arith.constant 0 : i32
    %c0_i32_1 = arith.constant 0 : i32
    return %c0_i32, %c0_i32_0 : i32, i32
  }
  func.func @transform_13(%arg0: i32, %arg1: i32) -> (i32, i32) {
    %c0_i32 = arith.constant 0 : i32
    %c0_i32_0 = arith.constant 0 : i32
    %c0_i32_1 = arith.constant 0 : i32
    return %c0_i32, %c0_i32_0 : i32, i32
  }
  func.func @transform_14(%arg0: i32, %arg1: i32) -> (i32, i32) {
    %c0_i32 = arith.constant 0 : i32
    %c0_i32_0 = arith.constant 0 : i32
    %c0_i32_1 = arith.constant 0 : i32
    return %c0_i32, %c0_i32_0 : i32, i32
  }
  func.func @transform_15(%arg0: i32, %arg1: i32) -> (i32, i32, i32) {
    %c0_i32 = arith.constant 0 : i32
    %c0_i32_0 = arith.constant 0 : i32
    return %arg1, %arg0, %c0_i32 : i32, i32, i32
  }
}

</mosaic_0001>

<bundles_post_ra>
// kernel: pointnetpp_forward.2
= control target key start
LH: loop header
LB: loop body
LE: loop exit
PB: predicated region body
PF: predicated region fallthrough
CT: control target
= control target key end

     0   :  { %s2448_s25 = smov 0   ;;  %s2450_s26 = smov 0   ;;  %s3098_s0 = inlined_call_operand.vmem [shape: f32[2,16,2], index: 0, kind: input, shape index: {}]   ;;  %s3099_s1 = inlined_call_operand.vmem [shape: f32[1,10], index: 1, kind: input, shape index: {}]   ;;  %s3100_s2 = inlined_call_operand.vmem [shape: bf16[2,20], index: 2, kind: input, shape index: {}]   ;;  %s3101_s3 = inlined_call_operand.vmem [shape: bf16[2,10,20], index: 3, kind: input, shape index: {}]   ;;  %s3102_s4 = inlined_call_operand.vmem [shape: bf16[2,10,20], index: 4, kind: input, shape index: {}]   ;;  %s3103_s5 = inlined_call_operand.vmem [shape: f32[1,20], index: 5, kind: input, shape index: {}]   ;;  %s3104_s6 = inlined_call_operand.vmem [shape: bf16[20,40], index: 6, kind: input, shape index: {}]   ;;  %s3105_s7 = inlined_call_operand.vmem [shape: f32[1,40], index: 7, kind: input, shape index: {}]   ;;  %s3106_s8 = inlined_call_operand.vmem [shape: bf16[40,80], index: 8, kind: input, shape index: {}]   ;;  %s3107_s9 = inlined_call_operand.vmem [shape: f32[1,80], index: 9, kind: input, shape index: {}]   ;;  %s3108_s10 = inlined_call_operand.vmem [shape: bf16[80,64], index: 10, kind: input, shape index: {}]   ;;  %s3109_s11 = inlined_call_operand.vmem [shape: f32[1,64], index: 11, kind: input, shape index: {}]   ;;  %s3110_s12 = inlined_call_operand.vmem [shape: bf16[2,16,64], index: 12, kind: output, shape index: {0}]   ;;  %s3111_s13 = inlined_call_operand.vmem [shape: f32[2,1,64], index: 13, kind: output, shape index: {1}]  }
   0x1   :  { %s2452_s27 = smov 0  }
   0x2 LB: > { %s33_s28 = sadd.s32 1, %s2364_s26  ;;  %p2202_p0 = scmp.ge.s32.totalorder %s2368_s27, 1  ;;  %s2368_s27 = sphi %s2452_s27, %s24_s27   ;;  %s2364_s26 = sphi %s2450_s26, %s3193_s26   ;;  %s2360_s25 = sphi %s2448_s25, %s3192_s25  }
   0x3   : > { %p34_p1 = scmp.ge.s32.totalorder %s33_s28, 2  ;;  %p413_p2 = scmp.lt.s32.totalorder %s2368_s27, 3 }
   0x5   : > { %s3195_s28 = smov (%p34_p1, %s33_s28), 0  ;;  %p414_p3 = pnand %p2202_p0, %p413_p2 }
   0x7   : > { %417 = sbr.rel (%p414_p3) target bundleno = 900 (0x384), region = 68 }
   0xc   : > { %p472_p4 = scmp.lt.s32.totalorder %s2360_s25, 1  ;;  %v2370_v0 = vmov 1   ;;  %v3116_v1 = vmov 0   ;;  %v2476_v4 = vld [vmem:[%s3099_s1] ss:$0 sm:$0xff] }
   0xd   : > { %2339 = vset.pattern.permute.xlu1 %v2370_v0  ;;  %2338 = vset.pattern.permute.xlu0 %v3116_v1  ;;  %v526_v18 = vld [vmem:[%s3100_s2] sm:$0x1]  ;;  %v3134_v30 = vmov 920167782   ;;  %v3136_v32 = vmov 1326507024  }
   0xe   : > { %s3197_s25 = smov (!%p472_p4, %s2360_s25), 1  ;;  %v527_v22 = vunpack.c.l.bf16 %v526_v18  ;;  %v3126_v35 = vmov 2475754826   ;;  %v3130_v37 = vmov 2131351028  }
   0xf   : > { %s2292_s29 = sshll.u32 %s3197_s25, 4  ;;  %v3132_v41 = vmov 2102212464   ;;  %v3124_v50 = vmov 683565275   ;;  %s496_s18 = scalar_lea.vmem %s3111_s13, %s3197_s25 }
  0x10   : > { %s479_s15 = scalar_lea.vmem %s3098_s0, %s2292_s29  ;;  %v2500_v28 = vperm.slane %v527_v22, 1  ;;  %v2521_v48 = vperm.slane %v527_v22, 0  ;;  %s2293_s29 = sshll.u32 %s3197_s25, 3 }
  0x11   : > { %v498_v2 = vld [vmem:[%s479_s15] sm:$0xff]  ;;  %v499_v3 = vld [vmem:[%s479_s15 + $0x8] sm:$0xff]  ;;  %s489_s15 = scalar_lea.vmem %s3110_s12, %s2293_s29 }
  0x12   : > { %517 = vperm.xlu1 %2339, %v498_v2   ;;  %503 = vperm.xlu0 %2338, %v498_v2   ;;  %3146 = vst [vmem:[#allocation4_spill] sm:$0xff] %v2500_v28 }
  0x1a   : > { %521 = vperm.xlu1 %2339, %v499_v3   ;;  %508 = vperm.xlu0 %2338, %v499_v3  }
  0x22   : > { %2340 = vset.pattern.permute.xlu0 %v2370_v0 }
  0x84   : > { %v518_v5 = vpop.permute.xlu1 %517  ;;  %v2478_v6 = vpop.permute.xlu0 %503 }
  0x85   : > { %v2481_v7 = vmul.f32 %v2476_v4, %v518_v5  ;;  %v2485_v8 = vmul.f32 %v2476_v4, %v2478_v6  ;;  %v2519_v46 = vmul.f32 %v2500_v28, %v518_v5 }
  0x87   : > { %3144 = vst [vmem:[#allocation2_spill] sm:$0xff] %v2481_v7  ;;  %v881_v9 = vand.u32 2139095040, %v2481_v7  ;;  %v539_v10 = vand.u32 2139095040, %v2485_v8  ;;  %v3112_v16 = vand.u32 2147483647, %v2481_v7 }
  0x88   : > { %3145 = vst [vmem:[#allocation3_spill] sm:$0xff] %v2485_v8  ;;  %v3113_v19 = vand.u32 2147483647, %v2485_v8 }
  0x89   : > { %v882_v11 = vshrl.u32 %v881_v9, 23  ;;  %v540_v12 = vshrl.u32 %v539_v10, 23  ;;  %v885_v23 = vand.u32 8388607, %v3112_v16  ;;  %3148 = vst [vmem:[#allocation6_spill] sm:$0xff] %v2519_v46 }
  0x8a   : > { %v543_v26 = vand.u32 8388607, %v3113_v19 }
  0x8b   : > { %v2218_v13 = vadd.s32 4294967169, %v882_v11  ;;  %v2207_v14 = vadd.s32 4294967169, %v540_v12  ;;  %v886_v29 = vor.u32 8388608, %v885_v23 }
  0x8c   : > { %v544_v39 = vor.u32 8388608, %v543_v26  ;;  %v2523_v49 = vpop.permute.xlu1 %521  ;;  %v2531_v54 = vpop.permute.xlu0 %508 }
  0x8d   : > { %v888_v15 = vadd.s32 1, %v2218_v13  ;;  %v546_v17 = vadd.s32 1, %v2207_v14  ;;  %3149 = vst [vmem:[#allocation7_spill] sm:$0xff] %v2523_v49  ;;  %v2527_v52 = vshll.u32 %v886_v29, 8  ;;  %v2544_v61 = vmul.f32 %v2476_v4, %v2523_v49 }
  0x8e   : > { %v2529_v53 = vshll.u32 %v544_v39, 8  ;;  %3151 = vst [vmem:[#allocation9_spill] sm:$0xff] %v2531_v54  ;;  %v2553_v0 = vmul.f32 %v2476_v4, %v2531_v54 }
  0x8f   : > { %vm889_vm0 = vcmp.gt.s32.totalorder %v888_v15, 0  ;;  %vm547_vm1 = vcmp.gt.s32.totalorder %v546_v17, 0  ;;  %3150 = vst [vmem:[#allocation8_spill] sm:$0xff] %v2527_v52  ;;  %v2581_v22 = vand.u32 65535, %v2527_v52  ;;  %v2584_v23 = vshrl.u32 %v2527_v52, 16 }
  0x90   : > { %v890_v20 = vsel %vm889_vm0, %v888_v15, 0  ;;  %v548_v24 = vsel %vm547_vm1, %v546_v17, 0  ;;  %3153 = vst [vmem:[#allocation11_spill] sm:$0xff] %v2544_v61  ;;  %v1036_v26 = vand.u32 2139095040, %v2544_v61 }
  0x91   : > { %v892_v21 = vand.u32 31, %v890_v20  ;;  %v550_v27 = vand.u32 31, %v548_v24  ;;  %v2505_v34 = vshrl.u32 %v890_v20, 5  ;;  %3154 = vst [vmem:[#allocation12_spill] sm:$0xff] %v2553_v0  ;;  %v2555_v2 = vshrl.u32 %v548_v24, 5 }
  0x92   : > { %v3114_v24 = vand.u32 2147483647, %v2544_v61 }
  0x93   : > { %v2496_v25 = vsub.s32 32, %v892_v21  ;;  %v907_v31 = vshll.u32 %v3134_v30, %v892_v21  ;;  %3147 = vst [vmem:[#allocation5_spill] sm:$0xff] %v2505_v34  ;;  %v898_v36 = vshll.u32 %v3126_v35, %v892_v21  ;;  %v901_v38 = vshll.u32 %v3130_v37, %v892_v21 }
  0x94   : > { %v904_v43 = vshll.u32 %v3132_v41, %v892_v21  ;;  %v2516_v45 = vsub.s32 32, %v550_v27  ;;  %v895_v51 = vshll.u32 %v3124_v50, %v892_v21  ;;  %vm913_vm2 = vcmp.lt.s32.totalorder %v2505_v34, 4 }
  0x95   : > { %v908_v33 = vshrl.u32 %v3136_v32, %v2496_v25  ;;  %v899_v40 = vshrl.u32 %v3130_v37, %v2496_v25  ;;  %v902_v42 = vshrl.u32 %v3132_v41, %v2496_v25  ;;  %v905_v44 = vshrl.u32 %v3134_v30, %v2496_v25 }
  0x96   : > { %v896_v55 = vshrl.u32 %v3126_v35, %v2496_v25  ;;  %vm910_vm3 = vcmp.lt.s32.totalorder %v2505_v34, 1  ;;  %v554_v59 = vshrl.u32 %v3126_v35, %v2516_v45  ;;  %v557_v60 = vshrl.u32 %v3130_v37, %v2516_v45 }
  0x97   : > { %v909_v47 = vor.u32 %v908_v33, %v907_v31  ;;  %v2535_v56 = vor.u32 %v899_v40, %v898_v36  ;;  %v903_v57 = vor.u32 %v902_v42, %v901_v38  ;;  %v906_v58 = vor.u32 %v905_v44, %v904_v43 }
  0x98   : > { %vm912_vm4 = vcmp.lt.s32.totalorder %v2505_v34, 3  ;;  %v560_v63 = vshrl.u32 %v3132_v41, %v2516_v45  ;;  %v553_v3 = vshll.u32 %v3124_v50, %v550_v27  ;;  %v556_v5 = vshll.u32 %v3126_v35, %v550_v27 }
  0x99   : > { %3152 = vst [vmem:[#allocation10_spill] sm:$0xff] %v2535_v56  ;;  %v923_v62 = vsel %vm913_vm2, %v909_v47, 1326507024  ;;  %v559_v9 = vshll.u32 %v3130_v37, %v550_v27  ;;  %v2560_v10 = vor.u32 %v896_v55, %v895_v51  ;;  %vm911_vm5 = vcmp.lt.s32.totalorder %v2505_v34, 2 }
  0x9a   : > { %v919_v11 = vsel %vm913_vm2, %v906_v58, 920167782  ;;  %v922_v4 = vsel %vm910_vm3, %v2535_v56, %v903_v57  ;;  %v924_v12 = vsel %vm912_vm4, %v906_v58, %v923_v62  ;;  %v2570_v13 = vor.u32 %v554_v59, %v553_v3 }
  0x9b   : > { %v2572_v14 = vor.u32 %v557_v60, %v556_v5  ;;  %v561_v15 = vor.u32 %v560_v63, %v559_v9  ;;  %v562_v17 = vshll.u32 %v3132_v41, %v550_v27  ;;  %v563_v18 = vshrl.u32 %v3134_v30, %v2516_v45 }
  0x9c   : > { %v565_v20 = vshll.u32 %v3134_v30, %v550_v27  ;;  %v566_v21 = vshrl.u32 %v3136_v32, %v2516_v45  ;;  %v918_v29 = vsel %vm910_vm3, %v2560_v10, %v2535_v56  ;;  %v920_v27 = vsel %vm912_vm4, %v903_v57, %v919_v11 }
  0x9d   : > { %v564_v31 = vor.u32 %v563_v18, %v562_v17  ;;  %v925_v36 = vsel %vm911_vm5, %v922_v4, %v924_v12  ;;  %vm568_vm6 = vcmp.lt.s32.totalorder %v2555_v2, 1  ;;  %vm570_vm7 = vcmp.lt.s32.totalorder %v2555_v2, 3 }
  0x9e   : > { %v567_v33 = vor.u32 %v566_v21, %v565_v20  ;;  %vm571_vm8 = vcmp.lt.s32.totalorder %v2555_v2, 4  ;;  %v576_v38 = vsel %vm568_vm6, %v2570_v13, %v2572_v14  ;;  %v580_v40 = vsel %vm568_vm6, %v2572_v14, %v561_v15 }
  0x9f   : > { %v577_v39 = vsel %vm571_vm8, %v564_v31, 920167782  ;;  %vm569_vm9 = vcmp.lt.s32.totalorder %v2555_v2, 2  ;;  %v1037_v47 = vshrl.u32 %v1036_v26, 23  ;;  %v2617_v51 = vsel %vm911_vm5, %v918_v29, %v920_v27 }
  0xa0   : > { %v581_v42 = vsel %vm571_vm8, %v567_v33, 1326507024  ;;  %v578_v43 = vsel %vm570_vm7, %v561_v15, %v577_v39  ;;  %v929_v55 = vand.u32 65535, %v925_v36  ;;  %v930_v58 = vshrl.u32 %v925_v36, 16 }
  0xa1   : > { %v582_v44 = vsel %vm570_vm7, %v564_v31, %v581_v42  ;;  %v579_v60 = vsel %vm569_vm9, %v576_v38, %v578_v43  ;;  %v585_v62 = vand.u32 65535, %v2529_v53  ;;  %v586_v63 = vshrl.u32 %v2529_v53, 16 }
  0xa2   : > { %v583_v59 = vsel %vm569_vm9, %v580_v40, %v582_v44  ;;  %v2627_v5 = vshrl.u32 %v3124_v50, %v2496_v25  ;;  %v2631_v9 = vsel %vm913_vm2, %v903_v57, 2102212464  ;;  %v2221_v11 = vadd.s32 4294967169, %v1037_v47 }
  0xa3   : > { %v588_v3 = vshrl.u32 %v583_v59, 16  ;;  %3155 = vst [vmem:[#allocation13_spill] sm:$0xff] %v2631_v9  ;;  %v1040_v4 = vand.u32 8388607, %v3114_v24  ;;  %v2639_v18 = vshrl.u32 %v3124_v50, %v2516_v45  ;;  %v587_v20 = vand.u32 65535, %v583_v59 }
  0xa4   : > { %v2642_v25 = vmul.u32 %v929_v55, %v2581_v22  ;;  %v2645_v21 = vmul.u32 %v930_v58, %v2581_v22  ;;  %v609_v26 = vand.u32 65535, %v579_v60  ;;  %v2650_v29 = vmul.u32 %v929_v55, %v2584_v23 }
  0xa5   : > { %v2647_v57 = vmul.u32 %v588_v3, %v585_v62  ;;  %v2653_v27 = vmul.u32 %v930_v58, %v2584_v23  ;;  %v610_v31 = vshrl.u32 %v579_v60, 16  ;;  %v1043_v33 = vadd.s32 1, %v2221_v11 }
  0xa6   : > { %v2657_v45 = vsel %vm571_vm8, %v561_v15, 2102212464  ;;  %v1041_v36 = vor.u32 8388608, %v1040_v4  ;;  %v3115_v38 = vand.u32 2147483647, %v2553_v0  ;;  %v694_v39 = vand.u32 2139095040, %v2553_v0 }
  0xa7   : > { %v589_v40 = vmul.u32 %v587_v20, %v585_v62  ;;  %v2661_v42 = vmul.u32 %v587_v20, %v586_v63  ;;  %v2663_v43 = vmul.u32 %v588_v3, %v586_v63  ;;  %vm1044_vm10 = vcmp.gt.s32.totalorder %v1043_v33, 0 }
  0xa8   : > { %v593_v44 = vshll.u32 %v2647_v57, 16  ;;  %v2666_v47 = vmul.u32 %v609_v26, %v585_v62  ;;  %v1045_v55 = vsel %vm1044_vm10, %v1043_v33, 0  ;;  %v695_v58 = vshrl.u32 %v694_v39, 23 }
  0xa9   : > { %v2668_v59 = vmul.u32 %v610_v31, %v585_v62  ;;  %v2670_v15 = vmul.u32 %v609_v26, %v586_v63  ;;  %v1046_v60 = vshrl.u32 %v1045_v55, 5  ;;  %v1047_v11 = vand.u32 31, %v1045_v55 }
  0xaa   : > { %v2672_v4 = vmul.u32 %v610_v31, %v586_v63  ;;  %v2674_v16 = vshll.u32 %v1041_v36, 8  ;;  %v2210_v20 = vadd.s32 4294967169, %v695_v58  ;;  %v698_v3 = vand.u32 8388607, %v3115_v38 }
  0xab   : > { %v1048_v19 = vsub.s32 32, %v1047_v11  ;;  %v1050_v24 = vshll.u32 %v3124_v50, %v1047_v11  ;;  %v1053_v33 = vshll.u32 %v3126_v35, %v1047_v11  ;;  %v1056_v62 = vshll.u32 %v3130_v37, %v1047_v11 }
  0xac   : > { %vm2681_vm11 = vc.u32 %v589_v40, %v593_v44  ;;  %v1059_v63 = vshll.u32 %v3132_v41, %v1047_v11  ;;  %v1062_v31 = vshll.u32 %v3134_v30, %v1047_v11  ;;  %vm1065_vm12 = vcmp.lt.s32.totalorder %v1046_v60, 1 }
  0xad   : > { %v1049_v36 = vshrl.u32 %v3124_v50, %v1048_v19  ;;  %v1051_v39 = vshrl.u32 %v3126_v35, %v1048_v19  ;;  %v1054_v55 = vshrl.u32 %v3130_v37, %v1048_v19  ;;  %v1057_v58 = vshrl.u32 %v3132_v41, %v1048_v19 }
  0xae   : > { %v1060_v38 = vshrl.u32 %v3134_v30, %v1048_v19  ;;  %v1063_v17 = vshrl.u32 %v3136_v32, %v1048_v19  ;;  %vm1067_vm13 = vcmp.lt.s32.totalorder %v1046_v60, 3  ;;  %vm1068_vm14 = vcmp.lt.s32.totalorder %v1046_v60, 4 }
  0xaf   : > { %v1052_v12 = vor.u32 %v1051_v39, %v1050_v24  ;;  %v1055_v1 = vor.u32 %v1054_v55, %v1053_v33  ;;  %v1058_v7 = vor.u32 %v1057_v58, %v1056_v62  ;;  %v701_v8 = vadd.s32 1, %v2210_v20 }
  0xb0   : > { %v1061_v11 = vor.u32 %v1060_v38, %v1059_v63  ;;  %v1064_v61 = vor.u32 %v1063_v17, %v1062_v31  ;;  %vm1066_vm15 = vcmp.lt.s32.totalorder %v1046_v60, 2  ;;  %v699_v50 = vor.u32 8388608, %v698_v3 }
  0xb1   : > { %v1069_v35 = vsel %vm1065_vm12, %v1049_v36, %v1052_v12  ;;  %v1070_v0 = vsel %vm1068_vm14, %v1058_v7, 2102212464  ;;  %v1073_v37 = vsel %vm1065_vm12, %v1052_v12, %v1055_v1  ;;  %v1077_v41 = vsel %vm1065_vm12, %v1055_v1, %v1058_v7 }
  0xb2   : > { %v1071_v30 = vsel %vm1067_vm13, %v1055_v1, %v1070_v0  ;;  %v1074_v19 = vsel %vm1068_vm14, %v1061_v11, 920167782  ;;  %v1078_v32 = vsel %vm1068_vm14, %v1064_v61, 1326507024  ;;  %vm702_vm0 = vcmp.gt.s32.totalorder %v701_v8, 0 }
  0xb3   : > { %v2697_v24 = vsel %vm1066_vm15, %v1069_v35, %v1071_v30  ;;  %v1075_v20 = vsel %vm1067_vm13, %v1058_v7, %v1074_v19  ;;  %v1079_v17 = vsel %vm1067_vm13, %v1061_v11, %v1078_v32  ;;  %v1082_v38 = vand.u32 65535, %v2674_v16 }
  0xb4   : > { %v1076_v3 = vsel %vm1066_vm15, %v1073_v37, %v1075_v20  ;;  %v1080_v33 = vsel %vm1066_vm15, %v1077_v41, %v1079_v17  ;;  %v1083_v62 = vshrl.u32 %v2674_v16, 16  ;;  %v703_v12 = vsel %vm702_vm0, %v701_v8, 0 }
  0xb5   : > { %v1084_v63 = vand.u32 65535, %v1080_v33  ;;  %v1085_v31 = vshrl.u32 %v1080_v33, 16  ;;  %v1106_v36 = vand.u32 65535, %v1076_v3  ;;  %v1107_v1 = vshrl.u32 %v1076_v3, 16 }
  0xb6   : > { %v3158_v0 = vmov 0   ;;  %v2708_v35 = vadd.s32 %v593_v44, %v589_v40  ;;  %v2712_v32 = vshll.u32 %v699_v50, 8  ;;  %v2714_v61 = vshrl.u32 %v703_v12, 5 }
  0xb7   : > { %v2706_v30 = vsel %vm2681_vm11, 1, %v3158_v0  ;;  %v1087_v37 = vmul.u32 %v1085_v31, %v1082_v38  ;;  %v1088_v41 = vmul.u32 %v1084_v63, %v1083_v62  ;;  %v705_v8 = vand.u32 31, %v703_v12 }
  0xb8   : > { %v1086_v60 = vmul.u32 %v1084_v63, %v1082_v38  ;;  %v1089_v39 = vmul.u32 %v1085_v31, %v1083_v62  ;;  %v1109_v55 = vmul.u32 %v1107_v1, %v1082_v38  ;;  %v1110_v58 = vmul.u32 %v1106_v36, %v1083_v62 }
  0xb9   : > { %v1090_v11 = vshll.u32 %v1087_v37, 16  ;;  %v1091_v26 = vshrl.u32 %v1087_v37, 16  ;;  %v1108_v19 = vmul.u32 %v1106_v36, %v1082_v38  ;;  %v1111_v20 = vmul.u32 %v1107_v1, %v1083_v62 }
  0xba   : > { %v1092_v40 = vshll.u32 %v1088_v41, 16  ;;  %v1093_v44 = vshrl.u32 %v1088_v41, 16  ;;  %v1112_v17 = vshll.u32 %v1109_v55, 16  ;;  %v1113_v3 = vshrl.u32 %v1109_v55, 16 }
  0xbb   : > { %vm1094_vm1 = vc.u32 %v1086_v60, %v1090_v11  ;;  %v1096_v50 = vadd.s32 %v1090_v11, %v1086_v60  ;;  %v1114_v33 = vshll.u32 %v1110_v58, 16  ;;  %v706_v7 = vsub.s32 32, %v705_v8 }
  0xbc   : > { %vm723_vm2 = vcmp.lt.s32.totalorder %v2714_v61, 1  ;;  %v1095_v12 = vsel %vm1094_vm1, 1, %v3158_v0  ;;  %v1115_v63 = vshrl.u32 %v1110_v58, 16  ;;  %vm1116_vm8 = vc.u32 %v1108_v19, %v1112_v17 }
  0xbd   : > { %v1118_v31 = vadd.s32 %v1112_v17, %v1108_v19  ;;  %v1097_v46 = vadd.s32 %v1095_v12, %v1089_v39  ;;  %vm1098_vm10 = vc.u32 %v1096_v50, %v1092_v40  ;;  %v1117_v38 = vsel %vm1116_vm8, 1, %v3158_v0 }
  0xbe   : > { %v3159_v62 = vmov 683565275   ;;  %v1099_v1 = vsel %vm1098_vm10, 1, %v3158_v0  ;;  %v1119_v37 = vadd.s32 %v1117_v38, %v1111_v20  ;;  %v3160_v41 = vmov 2475754826  }
  0xbf   : > { %v708_v36 = vshll.u32 %v3159_v62, %v705_v8  ;;  %vm1120_vm11 = vc.u32 %v1118_v31, %v1114_v33  ;;  %v711_v60 = vshll.u32 %v3160_v41, %v705_v8  ;;  %v1101_v55 = vadd.s32 %v1099_v1, %v1097_v46 }
  0xc0   : > { %v1121_v11 = vsel %vm1120_vm11, 1, %v3158_v0  ;;  %v709_v52 = vshrl.u32 %v3160_v41, %v706_v7  ;;  %v3161_v58 = vmov 2131351028   ;;  %v3162_v40 = vmov 2102212464  }
  0xc1   : > { %v712_v54 = vshrl.u32 %v3161_v58, %v706_v7  ;;  %v1123_v19 = vadd.s32 %v1121_v11, %v1119_v37  ;;  %v714_v39 = vshll.u32 %v3161_v58, %v705_v8  ;;  %v715_v17 = vshrl.u32 %v3162_v40, %v706_v7 }
  0xc2   : > { %v717_v50 = vshll.u32 %v3162_v40, %v705_v8  ;;  %v1102_v12 = vadd.s32 %v1101_v55, %v1091_v26  ;;  %v710_v28 = vor.u32 %v709_v52, %v708_v36  ;;  %v3163_v38 = vmov 920167782  }
  0xc3   : > { %v713_v20 = vor.u32 %v712_v54, %v711_v60  ;;  %v718_v49 = vshrl.u32 %v3163_v38, %v706_v7  ;;  %v1124_v56 = vadd.s32 %v1123_v19, %v1113_v3  ;;  %v716_v46 = vor.u32 %v715_v17, %v714_v39 }
  0xc4   : > { %v720_v1 = vshll.u32 %v3163_v38, %v705_v8  ;;  %v3164_v9 = vmov 1326507024   ;;  %v2731_v34 = vadd.s32 %v1102_v12, %v1093_v44  ;;  %v2733_v37 = vadd.s32 %v1118_v31, %v1114_v33 }
  0xc5   : > { %v721_v41 = vshrl.u32 %v3164_v9, %v706_v7  ;;  %v719_v11 = vor.u32 %v718_v49, %v717_v50  ;;  %vm724_vm12 = vcmp.lt.s32.totalorder %v2714_v61, 2  ;;  %v1125_v58 = vadd.s32 %v1124_v56, %v1115_v63 }
  0xc6   : > { %vm726_vm13 = vcmp.lt.s32.totalorder %v2714_v61, 4  ;;  %v731_v52 = vsel %vm723_vm2, %v710_v28, %v713_v20  ;;  %vm1128_vm14 = vc.u32 %v2731_v34, %v2733_v37  ;;  %v707_v54 = vshrl.u32 %v3159_v62, %v706_v7 }
  0xc7   : > { %v722_v40 = vor.u32 %v721_v41, %v720_v1  ;;  %vm725_vm15 = vcmp.lt.s32.totalorder %v2714_v61, 3  ;;  %v732_v9 = vsel %vm726_vm13, %v719_v11, 920167782  ;;  %v1129_v8 = vadd.s32 1, %v1125_v58 }
  0xc8   : > { %v728_v26 = vsel %vm726_vm13, %v716_v46, 2102212464  ;;  %v733_v49 = vsel %vm725_vm15, %v716_v46, %v732_v9  ;;  %v735_v56 = vsel %vm723_vm2, %v713_v20, %v716_v46  ;;  %v727_v44 = vsel %vm723_vm2, %v707_v54, %v710_v28 }
  0xc9   : > { %v734_v3 = vsel %vm724_vm12, %v731_v52, %v733_v49  ;;  %v736_v33 = vsel %vm726_vm13, %v722_v40, 1326507024  ;;  %v740_v63 = vand.u32 65535, %v2712_v32  ;;  %v1130_v31 = vsel %vm1128_vm14, %v1129_v8, %v1125_v58 }
  0xca   : > { %v737_v7 = vsel %vm725_vm15, %v719_v11, %v736_v33  ;;  %v764_v62 = vand.u32 65535, %v734_v3  ;;  %v765_v36 = vshrl.u32 %v734_v3, 16  ;;  %v3165_v60 = vmul.u32 %v2674_v16, %v2697_v24 }
  0xcb   : > { %v729_v19 = vsel %vm725_vm15, %v713_v20, %v728_v26  ;;  %v738_v39 = vsel %vm724_vm12, %v735_v56, %v737_v7  ;;  %v741_v28 = vshrl.u32 %v2712_v32, 16  ;;  %v595_v17 = vshll.u32 %v2661_v42, 16 }
  0xcc   : > { %v1131_v55 = vadd.s32 %v1130_v31, %v3165_v60  ;;  %v742_v50 = vand.u32 65535, %v738_v39  ;;  %v743_v12 = vshrl.u32 %v738_v39, 16  ;;  %v767_v38 = vmul.u32 %v765_v36, %v740_v63 }
  0xcd   : > { %v600_v46 = vadd.s32 %v2706_v30, %v2663_v43  ;;  %v768_v41 = vmul.u32 %v764_v62, %v741_v28  ;;  %v594_v11 = vshrl.u32 %v2647_v57, 16  ;;  %v2762_v16 = vsel %vm724_vm12, %v727_v44, %v729_v19 }
  0xce   : > { %v1132_v1 = vadd.s32 536870912, %v1131_v55  ;;  %v745_v24 = vmul.u32 %v743_v12, %v740_v63  ;;  %v746_v20 = vmul.u32 %v742_v50, %v741_v28  ;;  %v766_v58 = vmul.u32 %v764_v62, %v740_v63 }
  0xcf   : > { %v769_v52 = vmul.u32 %v765_v36, %v741_v28  ;;  %v770_v54 = vshll.u32 %v767_v38, 16  ;;  %vm601_vm0 = vc.u32 %v2708_v35, %v595_v17  ;;  %v744_v9 = vmul.u32 %v742_v50, %v740_v63 }
  0xd0   : > { %v2764_v40 = vshrl.u32 %v1132_v1, 30  ;;  %v747_v8 = vmul.u32 %v743_v12, %v741_v28  ;;  %v748_v43 = vshll.u32 %v745_v24, 16  ;;  %v772_v30 = vshll.u32 %v768_v41, 16 }
  0xd1   : > { %v750_v57 = vshll.u32 %v746_v20, 16  ;;  %vm774_vm1 = vc.u32 %v766_v58, %v770_v54  ;;  %v776_v61 = vadd.s32 %v770_v54, %v766_v58  ;;  %v602_v44 = vsel %vm601_vm0, 1, %v3158_v0 }
  0xd2   : > { %v1134_v26 = vshll.u32 %v2764_v40, 30  ;;  %vm752_vm2 = vc.u32 %v744_v9, %v748_v43  ;;  %v754_v49 = vadd.s32 %v748_v43, %v744_v9  ;;  %v775_v56 = vsel %vm774_vm1, 1, %v3158_v0 }
  0xd3   : > { %v753_v33 = vsel %vm752_vm2, 1, %v3158_v0  ;;  %v777_v35 = vadd.s32 %v775_v56, %v769_v52  ;;  %vm778_vm8 = vc.u32 %v776_v61, %v772_v30  ;;  %v771_v31 = vshrl.u32 %v767_v38, 16 }
  0xd4   : > { %v2770_v3 = vsub.s32 %v1131_v55, %v1134_v26  ;;  %v755_v63 = vadd.s32 %v753_v33, %v747_v8  ;;  %vm756_vm10 = vc.u32 %v754_v49, %v750_v57  ;;  %v779_v7 = vsel %vm778_vm8, 1, %v3158_v0  ;;  %v3175_v33 = vld [vmem:[#allocation7_spill] sm:$0xff] }
  0xd5   : > { %v757_v36 = vsel %vm756_vm10, 1, %v3158_v0  ;;  %v781_v60 = vadd.s32 %v779_v7, %v777_v35  ;;  %v749_v19 = vshrl.u32 %v745_v24, 16  ;;  %v604_v55 = vadd.s32 %v602_v44, %v600_v46 }
  0xd6   : > { %vm1136_vm11 = vcmp.lt.s32.totalorder %v2770_v3, 0  ;;  %v1137_v62 = vsub.s32 0, %v2770_v3  ;;  %v759_v39 = vadd.s32 %v757_v36, %v755_v63  ;;  %v615_v28 = vshll.u32 %v2668_v59, 16 }
  0xd7   : > { %v751_v50 = vshrl.u32 %v746_v20, 16  ;;  %v773_v12 = vshrl.u32 %v768_v41, 16  ;;  %v782_v1 = vadd.s32 %v781_v60, %v771_v31  ;;  %v2779_v52 = vadd.s32 %v776_v61, %v772_v30 }
  0xd8   : > { %v1138_v17 = vsel %vm1136_vm11, %v1137_v62, %v2770_v3  ;;  %v760_v58 = vadd.s32 %v759_v39, %v749_v19  ;;  %vm619_vm12 = vc.u32 %v2666_v47, %v615_v28  ;;  %v617_v9 = vshll.u32 %v2670_v15, 16 }
  0xd9   : > { %v1139_v38 = vclz %v1138_v17  ;;  %v783_v54 = vadd.s32 %v782_v1, %v773_v12  ;;  %v620_v24 = vsel %vm619_vm12, 1, %v3158_v0  ;;  %v621_v46 = vadd.s32 %v615_v28, %v2666_v47  ;;  %v2295_v28 = vld [vmem:[%s3101_s3 + $0x8] sm:$0x10]  ;;  %v2239_v1 = vld [vmem:[%s3102_s4] sm:$0xf] }
  0xda   : > { %v2785_v43 = vadd.s32 %v760_v58, %v751_v50  ;;  %v605_v26 = vadd.s32 %v604_v55, %v594_v11  ;;  %v622_v41 = vadd.s32 %v620_v24, %v2672_v4  ;;  %v935_v20 = vshll.u32 %v2645_v21, 16  ;;  %v2228_v55 = vld [vmem:[%s3101_s3 + $0x8] sm:$0xf] }
  0xdb   : > { %v2222_v8 = vadd.s32 4294967294, %v1139_v38  ;;  %v572_v30 = vsel %vm568_vm6, %v2639_v18, %v2570_v13  ;;  %v787_v57 = vadd.s32 1, %v783_v54  ;;  %vm623_vm13 = vc.u32 %v621_v46, %v617_v9  ;;  %v2296_v38 = vld [vmem:[%s3102_s4] sm:$0x10] }
  0xdc   : > { %v784_v61 = vmul.u32 %v2712_v32, %v2762_v16  ;;  %vm786_vm14 = vc.u32 %v2785_v43, %v2779_v52  ;;  %v596_v47 = vshrl.u32 %v2661_v42, 16  ;;  %v624_v11 = vsel %vm623_vm13, 1, %v3158_v0 }
  0xdd   : > { %v574_v4 = vsel %vm570_vm7, %v2572_v14, %v2657_v45  ;;  %v788_v49 = vsel %vm786_vm14, %v787_v57, %v783_v54  ;;  %v616_v13 = vshrl.u32 %v2668_v59, 16  ;;  %v626_v18 = vadd.s32 %v624_v11, %v622_v41 }
  0xde   : > { %v3166_v56 = vand.u32 65535, %v2617_v51  ;;  %vm2223_vm6 = vcmp.lt.s32.totalorder %v2222_v8, 0  ;;  %v789_v16 = vadd.s32 %v788_v49, %v784_v61  ;;  %v2807_v44 = vadd.s32 %v605_v26, %v596_v47 }
  0xdf   : > { %v937_v42 = vshll.u32 %v2650_v29, 16  ;;  %vm2811_vm15 = vc.u32 %v2642_v25, %v935_v20  ;;  %v618_v14 = vshrl.u32 %v2670_v15, 16  ;;  %v627_v45 = vadd.s32 %v626_v18, %v616_v13  ;;  %v2215_v15 = vld [vmem:[%s3101_s3] sm:$0xf]  ;;  %v3172_v13 = vld [vmem:[#allocation13_spill] sm:$0xff] }
  0xe0   : > { %v953_v32 = vmul.u32 %v3166_v56, %v2581_v22  ;;  %v941_v59 = vadd.s32 %v935_v20, %v2642_v25  ;;  %v575_v35 = vsel %vm569_vm9, %v572_v30, %v574_v4  ;;  %v790_v63 = vadd.s32 536870912, %v789_v16  ;;  %v2294_v25 = vld [vmem:[%s3101_s3] sm:$0x10] }
  0xe1   : > { %v2819_v31 = vadd.s32 %v621_v46, %v617_v9  ;;  %v3169_v7 = vshrl.u32 %v2617_v51, 16  ;;  %v2826_v36 = vsel %vm2223_vm6, 0, %v2222_v8  ;;  %vm858_vm7 = vcmask 1044480  }
  0xe2   : > { %v628_v2 = vadd.s32 %v627_v45, %v618_v14  ;;  %v3170_v60 = vmov %v3166_v56  ;;  %v2839_v39 = vshrl.u32 %v790_v63, 30  ;;  %v940_v17 = vsel %vm2811_vm15, 1, %v3158_v0  ;;  %v3176_v14 = vld [vmem:[#allocation4_spill] sm:$0xff] }
  0xe3   : > { %v2824_v62 = vmul.u32 %v3169_v7, %v2581_v22  ;;  %v2837_v19 = vmul.u32 %v3170_v60, %v2584_v23  ;;  %v2216_v22 = vor.u32 %v2294_v25, %v2215_v15  ;;  %vm631_vm9 = vc.u32 %v2807_v44, %v2819_v31 }
  0xe4   : > { %v629_v50 = vmul.u32 %v2529_v53, %v575_v35  ;;  %v2229_v12 = vor.u32 %v2295_v28, %v2228_v55  ;;  %v632_v58 = vadd.s32 1, %v628_v2  ;;  %v1147_v54 = vsub.s32 4294967266, %v2826_v36 }
  0xe5   : > { %v792_v9 = vshll.u32 %v2839_v39, 30  ;;  %v860_v24 = vsel %vm858_vm7, %v2216_v22, 0  ;;  %vm943_vm0 = vc.u32 %v941_v59, %v937_v42  ;;  %v2240_v46 = vor.u32 %v2296_v38, %v2239_v1 }
  0xe6   : > { %869 = vmatpush.bf16.msra.mxu0 %v860_v24  ;;  %v1201_v53 = vsel %vm858_vm7, %v2229_v12, 0  ;;  %v633_v8 = vsel %vm631_vm9, %v632_v58, %v628_v2  ;;  %v957_v26 = vshll.u32 %v2824_v62, 16  ;;  %v942_v41 = vadd.s32 %v940_v17, %v2653_v27  ;;  %v3173_v27 = vld [vmem:[#allocation10_spill] sm:$0xff] }
  0xe7   : > { %v2867_v20 = vmul.f32 %v2521_v48, %v2478_v6  ;;  %v793_v30 = vsub.s32 %v789_v16, %v792_v9  ;;  %1210 = vmatpush.bf16.msra.mxu1 %v1201_v53  ;;  %v634_v57 = vadd.s32 %v633_v8, %v629_v50  ;;  %v914_v47 = vsel %vm910_vm3, %v2627_v5, %v2560_v10 }
  0xe8   : > { %v1539_v11 = vsel %vm858_vm7, %v2240_v46, 0  ;;  %v944_v4 = vsel %vm943_vm0, 1, %v3158_v0  ;;  %v959_v49 = vshll.u32 %v2837_v19, 16  ;;  %v916_v6 = vsel %vm912_vm4, %v3173_v27, %v3172_v13 }
  0xe9   : > { %vm794_vm1 = vcmp.lt.s32.totalorder %v793_v30, 0  ;;  %v795_v18 = vsub.s32 0, %v793_v30  ;;  %1548 = vmatpush.bf16.msra.mxu3 %v1539_v11  ;;  %v635_v56 = vadd.s32 536870912, %v634_v57  ;;  %v3174_v16 = vmov %v3169_v7 }
  0xea   : > { %v956_v42 = vmul.u32 %v3174_v16, %v2584_v23  ;;  %v1148_v10 = vadd.s32 127, %v1147_v54  ;;  %vm961_vm3 = vc.u32 %v953_v32, %v957_v26  ;;  %v963_v5 = vadd.s32 %v957_v26, %v953_v32  ;;  %v3177_v23 = vld [vmem:[#allocation9_spill] sm:$0xff] }
  0xeb   : > { %v533_v45 = vmul.f32 %v3176_v14, %v3175_v33  ;;  %v796_v59 = vsel %vm794_vm1, %v795_v18, %v793_v30  ;;  %v2885_v35 = vshrl.u32 %v635_v56, 30  ;;  %v946_v63 = vadd.s32 %v944_v4, %v942_v41  ;;  %v3178_v4 = vld [vmem:[#allocation8_spill] sm:$0xff] }
  0xec   : > { %v1143_v7 = vsub.s32 32, %v2826_v36  ;;  %v797_v15 = vclz %v796_v59  ;;  %v962_v25 = vsel %vm961_vm3, 1, %v3158_v0  ;;  %vm965_vm4 = vc.u32 %v963_v5, %v959_v49 }
  0xed   : > { %v917_v51 = vsel %vm911_vm5, %v914_v47, %v916_v6  ;;  %v530_v2 = vmul.f32 %v2521_v48, %v3177_v23  ;;  %v637_v32 = vshll.u32 %v2885_v35, 30  ;;  %v936_v60 = vshrl.u32 %v2645_v21, 16 }
  0xee   : > { %v1127_v22 = vadd.s32 %v2733_v37, %v2731_v34  ;;  %v1149_v55 = vshll.u32 %v1148_v10, 23  ;;  %v2211_v28 = vadd.s32 4294967294, %v797_v15  ;;  %v964_v17 = vadd.s32 %v962_v25, %v956_v42 }
  0xef   : > { %v785_v50 = vadd.s32 %v2779_v52, %v2785_v43  ;;  %v638_v12 = vsub.s32 %v634_v57, %v637_v32  ;;  %v947_v1 = vadd.s32 %v946_v63, %v936_v60  ;;  %v966_v38 = vsel %vm965_vm4, 1, %v3158_v0 }
  0xf0   : > { %v1144_v48 = vshll.u32 %v2770_v3, %v2826_v36  ;;  %v1145_v58 = vshrl.u32 %v1127_v22, %v1143_v7  ;;  %vm2212_vm5 = vcmp.lt.s32.totalorder %v2211_v28, 0  ;;  %v938_v21 = vshrl.u32 %v2650_v29, 16 }
  0xf1   : > { %v800_v54 = vsel %vm2212_vm5, 0, %v2211_v28  ;;  %vm639_vm2 = vcmp.lt.s32.totalorder %v638_v12, 0  ;;  %v640_v34 = vsub.s32 0, %v638_v12  ;;  %v958_v37 = vshrl.u32 %v2824_v62, 16 }
  0xf2   : > { %v1150_v9 = vor.u32 4788187, %v1149_v55  ;;  %v801_v24 = vsub.s32 32, %v800_v54  ;;  %v805_v53 = vsub.s32 4294967266, %v800_v54  ;;  %v968_v52 = vadd.s32 %v966_v38, %v964_v17 }
  0xf3   : > { %v802_v43 = vshll.u32 %v793_v30, %v800_v54  ;;  %v641_v46 = vsel %vm639_vm2, %v640_v34, %v638_v12  ;;  %v2904_v8 = vadd.s32 %v947_v1, %v938_v21  ;;  %v960_v0 = vshrl.u32 %v2837_v19, 16  ;;  %v3179_v30 = vld [vmem:[#allocation6_spill] sm:$0xff]  ;;  %v3183_v34 = vld [vmem:[#allocation3_spill] sm:$0xff] }
  0xf4   : > { %v803_v3 = vshrl.u32 %v785_v50, %v801_v24  ;;  %v806_v36 = vadd.s32 127, %v805_v53  ;;  %v642_v26 = vclz %v641_v46  ;;  %v969_v41 = vadd.s32 %v968_v52, %v958_v37 }
  0xf5   : > { %v1146_v29 = vor.u32 %v1145_v58, %v1144_v48  ;;  %v2907_v57 = vadd.s32 %v963_v5, %v959_v49  ;;  %v971_v13 = vmul.u32 %v3178_v4, %v917_v51  ;;  %v1151_v27 = vand.u32 2147483647, %v1150_v9 }
  0xf6   : > { %v804_v61 = vor.u32 %v803_v3, %v802_v43  ;;  %v807_v47 = vshll.u32 %v806_v36, 23  ;;  %v2208_v62 = vadd.s32 4294967294, %v642_v26  ;;  %v970_v11 = vadd.s32 %v969_v41, %v960_v0 }
  0xf7   : > { %v2912_v6 = vadd.f32 %v3179_v30, %v2867_v20  ;;  %v2914_v18 = vadd.f32 %v533_v45, %v530_v2  ;;  %vm973_vm10 = vc.u32 %v2904_v8, %v2907_v57  ;;  %v1153_v56 = vcvt.s32.f32 %v1146_v29  ;;  %v3180_v45 = vld [vmem:[#allocation12_spill] sm:$0xff] }
  0xf8   : > { %v808_v19 = vor.u32 4788187, %v807_v47  ;;  %vm2209_vm8 = vcmp.lt.s32.totalorder %v2208_v62, 0  ;;  %v974_v49 = vadd.s32 1, %v970_v11  ;;  %v630_v16 = vadd.s32 %v2819_v31, %v2807_v44 }
  0xf9   : > { %v645_v42 = vsel %vm2209_vm8, 0, %v2208_v62  ;;  %v815_v10 = vsub.s32 4, %v2839_v39  ;;  %v811_v33 = vcvt.s32.f32 %v804_v61  ;;  %v1154_v59 = vmul.f32 %v1153_v56, %v1151_v27 }
  0xfa   : > { %v809_v5 = vand.u32 2147483647, %v808_v19  ;;  %v646_v14 = vsub.s32 32, %v645_v42  ;;  %v650_v20 = vsub.s32 4294967266, %v645_v42  ;;  %vm693_vm11 = vcmp.lt.s32.totalorder %v3180_v45, 0 }
  0xfb   : > { %v647_v63 = vshll.u32 %v638_v12, %v645_v42  ;;  %v975_v7 = vsel %vm973_vm10, %v974_v49, %v970_v11  ;;  %v816_v2 = vsel %vm693_vm11, %v815_v10, %v2839_v39  ;;  %v1155_v22 = vxor.u32 2147483648, %v1154_v59  ;;  %v3182_v12 = vld [vmem:[#allocation11_spill] sm:$0xff] }
  0xfc   : > { %v812_v15 = vmul.f32 %v811_v33, %v809_v5  ;;  %v648_v25 = vshrl.u32 %v630_v16, %v646_v14  ;;  %v651_v51 = vadd.s32 127, %v650_v20  ;;  %v976_v23 = vadd.s32 %v975_v7, %v971_v13 }
  0xfd   : > { %v3181_v55 = vand.u32 2147483647, %v3180_v45  ;;  %vm1035_vm13 = vcmp.lt.s32.totalorder %v3182_v12, 0  ;;  %v660_v38 = vsub.s32 4, %v2885_v35  ;;  %vm538_vm14 = vcmp.lt.s32.totalorder %v3183_v34, 0 }
  0xfe   : > { %v813_v32 = vxor.u32 2147483648, %v812_v15  ;;  %v649_v44 = vor.u32 %v648_v25, %v647_v63  ;;  %v652_v31 = vshll.u32 %v651_v51, 23  ;;  %v977_v60 = vadd.s32 536870912, %v976_v23 }
  0xff   : > { %vm692_vm12 = vcmp.le.f32.partialorder %v3181_v55, 0.7853982  ;;  %v1156_v37 = vsel %vm1035_vm13, %v1155_v22, %v1154_v59  ;;  %v3184_v43 = vand.u32 2147483647, %v3182_v12  ;;  %v661_v0 = vsel %vm538_vm14, %v660_v38, %v2885_v35 }
 0x100   : > { %v814_v28 = vsel %vm693_vm11, %v813_v32, %v812_v15  ;;  %v653_v17 = vor.u32 4788187, %v652_v31  ;;  %v2925_v50 = vshrl.u32 %v977_v60, 30  ;;  %v2930_v48 = vsel %vm692_vm12, 0, %v816_v2 }
 0x101   : > { %v817_v1 = vsel %vm692_vm12, %v3180_v45, %v814_v28  ;;  %v656_v21 = vcvt.s32.f32 %v649_v44  ;;  %vm2940_vm6 = vcmp.le.f32.partialorder %v3184_v43, 0.7853982  ;;  %v835_v3 = vadd.s32 3, %v2930_v48 }
 0x102   : > { %v819_v39 = vmul.f32 %v817_v1, %v817_v1  ;;  %v654_v58 = vand.u32 2147483647, %v653_v17  ;;  %v979_v54 = vshll.u32 %v2925_v50, 30  ;;  %v2952_v29 = vsel %vm2940_vm6, %v3182_v12, %v1156_v37 }
 0x103   : > { %v3187_v61 = vand.u32 2147483647, %v3183_v34  ;;  %v836_v27 = vand.u32 3, %v835_v3  ;;  %v2963_v42 = vmul.f32 %v2952_v29, %v2952_v29  ;;  %vm834_vm5 = vweird.f32 %v3180_v45 }
 0x104   : > { %v657_v9 = vmul.f32 %v656_v21, %v654_v58  ;;  %v820_v24 = vmul.f32 -0.001358992, %v819_v39  ;;  %v827_v53 = vmul.f32 -0.00019511016, %v819_v39  ;;  %v2936_v52 = vsub.s32 %v976_v23, %v979_v54 }
 0x105   : > { %vm537_vm9 = vcmp.le.f32.partialorder %v3187_v61, 0.7853982  ;;  %vm838_vm0 = vcmp.eq.s32.totalorder %v836_v27, 0  ;;  %vm837_vm1 = vcmp.lt.s32.totalorder %v836_v27, 2  ;;  %vm841_vm3 = vcmp.eq.s32.totalorder %v836_v27, 2 }
 0x106   : > { %v658_v36 = vxor.u32 2147483648, %v657_v9  ;;  %v821_v26 = vadd.f32 0.041655596, %v820_v24  ;;  %v828_v41 = vadd.f32 0.008332121, %v827_v53  ;;  %vm981_vm15 = vcmp.lt.s32.totalorder %v2936_v52, 0 }
 0x107   : > { %v982_v47 = vsub.s32 0, %v2936_v52  ;;  %v663_v62 = vsel %vm537_vm9, 0, %v661_v0  ;;  %v1169_v23 = vmul.f32 -0.00019511016, %v2963_v42  ;;  %v972_v60 = vadd.s32 %v2907_v57, %v2904_v8 }
 0x108   : > { %v659_v35 = vsel %vm538_vm14, %v658_v36, %v657_v9  ;;  %v822_v11 = vmul.f32 %v821_v26, %v819_v39  ;;  %v829_v4 = vmul.f32 %v828_v41, %v819_v39  ;;  %v680_v10 = vadd.s32 3, %v663_v62 }
 0x109   : > { %v662_v13 = vsel %vm537_vm9, %v3183_v34, %v659_v35  ;;  %v983_v30 = vsel %vm981_vm15, %v982_v47, %v2936_v52  ;;  %v1363_v31 = vand.u32 3, %v663_v62  ;;  %v1162_v55 = vmul.f32 -0.001358992, %v2963_v42 }
 0x10a   : > { %v664_v19 = vmul.f32 %v662_v13, %v662_v13  ;;  %v823_v49 = vadd.f32 -0.4999988, %v822_v11  ;;  %v830_v56 = vadd.f32 -0.16666654, %v829_v4  ;;  %v984_v16 = vclz %v983_v30 }
 0x10b   : > { %v2965_v51 = vand.u32 3, %v680_v10  ;;  %v1170_v28 = vadd.f32 0.008332121, %v1169_v23  ;;  %v1157_v54 = vsub.s32 4, %v2764_v40  ;;  %vm1364_vm11 = vcmp.lt.s32.totalorder %v1363_v31, 2 }
 0x10c   : > { %v665_v5 = vmul.f32 -0.001358992, %v664_v19  ;;  %v672_v33 = vmul.f32 -0.00019511016, %v664_v19  ;;  %v824_v14 = vmul.f32 %v823_v49, %v819_v39  ;;  %v831_v20 = vmul.f32 %v830_v56, %v819_v39 }
 0x10d   : > { %v2219_v59 = vadd.s32 4294967294, %v984_v16  ;;  %vm683_vm2 = vcmp.eq.s32.totalorder %v2965_v51, 0  ;;  %vm686_vm8 = vcmp.eq.s32.totalorder %v2965_v51, 2  ;;  %vm682_vm10 = vcmp.lt.s32.totalorder %v2965_v51, 2 }
 0x10e   : > { %v666_v63 = vadd.f32 0.041655596, %v665_v5  ;;  %v673_v7 = vadd.f32 0.008332121, %v672_v33  ;;  %v825_v15 = vadd.f32 1.0, %v824_v14  ;;  %v832_v25 = vadd.f32 1.0, %v831_v20 }
 0x10f   : > { %vm2220_vm4 = vcmp.lt.s32.totalorder %v2219_v59, 0  ;;  %v1517_v57 = vand.u32 3, %v2930_v48  ;;  %vm679_vm12 = vweird.f32 %v3183_v34  ;;  %v1163_v0 = vadd.f32 0.041655596, %v1162_v55  ;;  %v2252_v20 = vld [vmem:[%s3102_s4 + $0x8] sm:$0xf] }
 0x110   : > { %v667_v2 = vmul.f32 %v666_v63, %v664_v19  ;;  %v674_v32 = vmul.f32 %v673_v7, %v664_v19  ;;  %v833_v44 = vmul.f32 %v832_v25, %v817_v1  ;;  %v987_v22 = vsel %vm2220_vm4, 0, %v2219_v59  ;;  %v2297_v59 = vld [vmem:[%s3102_s4 + $0x8] sm:$0x10] }
 0x111   : > { %v842_v58 = vxor.u32 2147483648, %v825_v15  ;;  %v988_v21 = vsub.s32 32, %v987_v22  ;;  %v992_v1 = vsub.s32 4294967266, %v987_v22  ;;  %v989_v24 = vshll.u32 %v2936_v52, %v987_v22  ;;  %v3188_v22 = vld [vmem:[#allocation2_spill] sm:$0xff] }
 0x112   : > { %v668_v17 = vadd.f32 -0.4999988, %v667_v2  ;;  %v675_v38 = vadd.f32 -0.16666654, %v674_v32  ;;  %v839_v39 = vxor.u32 2147483648, %v833_v44  ;;  %v1171_v41 = vmul.f32 %v1170_v28, %v2963_v42 }
 0x113   : > { %v990_v53 = vshrl.u32 %v972_v60, %v988_v21  ;;  %v993_v43 = vadd.s32 127, %v992_v1  ;;  %v843_v26 = vsel %vm841_vm3, %v842_v58, %v833_v44  ;;  %vm1365_vm14 = vcmp.eq.s32.totalorder %v1363_v31, 0 }
 0x114   : > { %v669_v37 = vmul.f32 %v668_v17, %v664_v19  ;;  %v676_v9 = vmul.f32 %v675_v38, %v664_v19  ;;  %v840_v8 = vsel %vm838_vm0, %v825_v15, %v839_v39  ;;  %vm1368_vm15 = vcmp.eq.s32.totalorder %v1363_v31, 2 }
 0x115   : > { %v844_v61 = vsel %vm837_vm1, %v840_v8, %v843_v26  ;;  %v991_v47 = vor.u32 %v990_v53, %v989_v24  ;;  %v994_v35 = vshll.u32 %v993_v43, 23  ;;  %vm1518_vm9 = vcmp.lt.s32.totalorder %v1517_v57, 2 }
 0x116   : > { %v670_v3 = vadd.f32 1.0, %v669_v37  ;;  %v677_v36 = vadd.f32 1.0, %v676_v9  ;;  %v1164_v52 = vmul.f32 %v1163_v0, %v2963_v42  ;;  %vm1519_vm0 = vcmp.eq.s32.totalorder %v1517_v57, 0 }
 0x117   : > { %v995_v11 = vor.u32 4788187, %v994_v35  ;;  %vm1522_vm4 = vcmp.eq.s32.totalorder %v1517_v57, 2  ;;  %v845_v30 = vsel %vm834_vm5, nan, %v844_v61  ;;  %v998_v19 = vcvt.s32.f32 %v991_v47 }
 0x118   : > { %v678_v62 = vmul.f32 %v677_v36, %v662_v13  ;;  %v687_v48 = vxor.u32 2147483648, %v670_v3  ;;  %v1172_v49 = vadd.f32 -0.16666654, %v1171_v41  ;;  %v1521_v16 = vsel %vm1519_vm0, %v825_v15, %v839_v39 }
 0x119   : > { %v996_v56 = vand.u32 2147483647, %v995_v11  ;;  %v1524_v13 = vsel %vm1522_vm4, %v842_v58, %v833_v44  ;;  %vm854_vm1 = vcmask 80896   ;;  %v1158_v2 = vsel %vm1035_vm13, %v1157_v54, %v2764_v40 }
 0x11a   : > { %v684_v4 = vxor.u32 2147483648, %v678_v62  ;;  %v688_v27 = vsel %vm686_vm8, %v687_v48, %v678_v62  ;;  %v1370_v33 = vsel %vm1368_vm15, %v687_v48, %v678_v62  ;;  %v1525_v14 = vsel %vm1518_vm9, %v1521_v16, %v1524_v13 }
 0x11b   : > { %v999_v7 = vmul.f32 %v998_v19, %v996_v56  ;;  %v1526_v25 = vsel %vm834_vm5, nan, %v1525_v14  ;;  %v1173_v32 = vmul.f32 %v1172_v49, %v2963_v42  ;;  %v2253_v31 = vor.u32 %v2297_v59, %v2252_v20 }
 0x11c   : > { %v685_v10 = vsel %vm683_vm2, %v670_v3, %v684_v4  ;;  %v1367_v5 = vsel %vm1365_vm14, %v670_v3, %v684_v4  ;;  %vm880_vm3 = vcmp.lt.s32.totalorder %v3188_v22, 0  ;;  %v1165_v45 = vadd.f32 -0.4999988, %v1164_v52 }
 0x11d   : > { %v689_v63 = vsel %vm682_vm10, %v685_v10, %v688_v27  ;;  %v1371_v15 = vsel %vm1364_vm11, %v1367_v5, %v1370_v33  ;;  %v1000_v60 = vxor.u32 2147483648, %v999_v7  ;;  %v3189_v28 = vand.u32 2147483647, %v3188_v22 }
 0x11e   : > { %v690_v23 = vsel %vm679_vm12, nan, %v689_v63  ;;  %v1372_v51 = vsel %vm679_vm12, nan, %v1371_v15  ;;  %v1002_v38 = vsub.s32 4, %v2925_v50  ;;  %v1878_v39 = vsel %vm858_vm7, %v2253_v31, 0 }
 0x11f   : > { %v846_v44 = vpack.c.bf16 %v845_v30, %v690_v23  ;;  %v1527_v55 = vpack.c.bf16 %v1526_v25, %v1372_v51  ;;  %vm3016_vm5 = vcmp.le.f32.partialorder %v3189_v28, 0.7853982  ;;  %v1001_v40 = vsel %vm880_vm3, %v1000_v60, %v999_v7  ;;  %1887 = vmatpush.bf16.msrb.mxu3 %v1878_v39 }
 0x120   : > { %v1004_v34 = vsel %vm3016_vm5, %v3188_v22, %v1001_v40  ;;  %v1160_v58 = vsel %vm2940_vm6, 0, %v1158_v2  ;;  %v1174_v21 = vadd.f32 1.0, %v1173_v32  ;;  %v1166_v54 = vmul.f32 %v1165_v45, %v2963_v42  ;;  %v2298_v45 = vld [vmem:[%s3104_s6] sm:$0xff] }
 0x121   : > { %2217 = vmatmul.msk.bf16.vlgmr.msra.gmra.mxu0 %vm854_vm1, %v846_v44  ;;  %2241 = vmatmul.msk.bf16.vlgmr.msra.gmra.mxu3 %vm854_vm1, %v1527_v55  ;;  %v1006_v1 = vmul.f32 %v1004_v34, %v1004_v34  ;;  %v1003_v37 = vsel %vm880_vm3, %v1002_v38, %v2925_v50  ;;  %v1177_v57 = vadd.s32 3, %v1160_v58  ;;  %v1855_v41 = vand.u32 3, %v1160_v58  ;;  %v1907_v44 = vld [vmem:[%s3104_s6 + $0x8] sm:$0x3]  ;;  %v1950_v55 = vld [vmem:[%s3106_s8 + $0x10] sm:$0xf] }
 0x122   : > { %v1175_v24 = vmul.f32 %v1174_v21, %v2952_v29  ;;  %v1005_v46 = vsel %vm3016_vm5, 0, %v1003_v37  ;;  %v1167_v0 = vadd.f32 1.0, %v1166_v54  ;;  %vm1176_vm11 = vweird.f32 %v3182_v12 }
 0x123   : > { %v1007_v9 = vmul.f32 -0.001358992, %v1006_v1  ;;  %v1014_v8 = vmul.f32 -0.00019511016, %v1006_v1  ;;  %v1178_v26 = vand.u32 3, %v1177_v57  ;;  %v1022_v35 = vadd.s32 3, %v1005_v46 }
 0x124   : > { %v1181_v61 = vxor.u32 2147483648, %v1175_v24  ;;  %v1184_v50 = vxor.u32 2147483648, %v1167_v0  ;;  %vm1857_vm13 = vcmp.eq.s32.totalorder %v1855_v41, 0  ;;  %v1701_v11 = vand.u32 3, %v1005_v46 }
 0x125   : > { %v1008_v53 = vadd.f32 0.041655596, %v1007_v9  ;;  %v1015_v43 = vadd.f32 0.008332121, %v1014_v8  ;;  %vm1180_vm7 = vcmp.eq.s32.totalorder %v1178_v26, 0  ;;  %vm1860_vm6 = vcmp.eq.s32.totalorder %v1855_v41, 2 }
 0x126   : > { %v1182_v29 = vsel %vm1180_vm7, %v1167_v0, %v1181_v61  ;;  %v1859_v52 = vsel %vm1857_vm13, %v1167_v0, %v1181_v61  ;;  %v1023_v19 = vand.u32 3, %v1022_v35  ;;  %vm1183_vm2 = vcmp.eq.s32.totalorder %v1178_v26, 2  ;;  %v2299_v61 = vld [vmem:[%s3106_s8] sm:$0xff] }
 0x127   : > { %v1009_v3 = vmul.f32 %v1008_v53, %v1006_v1  ;;  %v1016_v36 = vmul.f32 %v1015_v43, %v1006_v1  ;;  %vm1179_vm8 = vcmp.lt.s32.totalorder %v1178_v26, 2  ;;  %v1185_v49 = vsel %vm1183_vm2, %v1184_v50, %v1175_v24  ;;  %v2342_v53 = vld [vmem:[%s3103_s5] ss:$0 sm:$0xff] }
 0x128   : > { %vm1856_vm10 = vcmp.lt.s32.totalorder %v1855_v41, 2  ;;  %v1862_v27 = vsel %vm1860_vm6, %v1184_v50, %v1175_v24  ;;  %v1186_v13 = vsel %vm1179_vm8, %v1182_v29, %v1185_v49  ;;  %vm1702_vm12 = vcmp.lt.s32.totalorder %v1701_v11, 2  ;;  %v2343_v35 = vld [vmem:[%s3105_s7] ss:$0 sm:$0xff] }
 0x129   : > { %v1010_v47 = vadd.f32 -0.4999988, %v1009_v3  ;;  %v1017_v42 = vadd.f32 -0.16666654, %v1016_v36  ;;  %v1863_v10 = vsel %vm1856_vm10, %v1859_v52, %v1862_v27  ;;  %vm1024_vm14 = vcmp.lt.s32.totalorder %v1023_v19, 2  ;;  %v2301_v49 = vld [vmem:[%s3108_s10] sm:$0xff] }
 0x12a   : > { %vm1703_vm15 = vcmp.eq.s32.totalorder %v1701_v11, 0  ;;  %vm1706_vm9 = vcmp.eq.s32.totalorder %v1701_v11, 2  ;;  %vm1025_vm0 = vcmp.eq.s32.totalorder %v1023_v19, 0  ;;  %vm1028_vm4 = vcmp.eq.s32.totalorder %v1023_v19, 2  ;;  %v2302_v19 = vld [vmem:[%s3108_s10 + $0x8] sm:$0xff] }
 0x12b   : > { %v1011_v62 = vmul.f32 %v1010_v47, %v1006_v1  ;;  %v1018_v48 = vmul.f32 %v1017_v42, %v1006_v1  ;;  %v1187_v33 = vsel %vm1176_vm11, nan, %v1186_v13  ;;  %v1864_v14 = vsel %vm1176_vm11, nan, %v1863_v10  ;;  %v2305_v47 = vld [vmem:[%s3108_s10 + $0x20] sm:$0xff] }
 0x12c   : > { %vm1021_vm3 = vweird.f32 %v3188_v22  ;;  %v1917_v60 = vunpack.c.l.b16 %v1907_v44  ;;  %vm1925_vm5 = vcmask 1041408   ;;  %v1964_v28 = vunpack.c.l.b16 %v1950_v55  ;;  %2046 = vmatpush.bf16.msra.mxu2 %v2305_v47 }
 0x12d   : > { %v1012_v4 = vadd.f32 1.0, %v1011_v62  ;;  %v1019_v30 = vadd.f32 1.0, %v1018_v48  ;;  %vm1921_vm7 = vcmask 162816   ;;  %vm1970_vm13 = vcmask 326656  }
 0x12e   : > { %v1919_v51 = vpack.c.b16 %v1917_v60, %v1917_v60  ;;  %v1967_v40 = vpack.c.b16 %v1964_v28, %v1964_v28  ;;  %vm2039_vm6 = vcmask 654336   ;;  %vm2061_vm2 = vcmask 519168  }
 0x12f   : > { %v1020_v56 = vmul.f32 %v1019_v30, %v1004_v34  ;;  %v1029_v16 = vxor.u32 2147483648, %v1012_v4  ;;  %v2303_v30 = vld [vmem:[%s3108_s10 + $0x10] sm:$0xff]  ;;  %vm2064_vm8 = vcmask 523264   ;;  %vm2074_vm10 = vcmask 516096  }
 0x130   : > { %v1927_v31 = vsel %vm1925_vm5, %v1919_v51, 0 }
 0x131   : > { %v1026_v5 = vxor.u32 2147483648, %v1020_v56  ;;  %v1030_v59 = vsel %vm1028_vm4, %v1029_v16, %v1020_v56  ;;  %v1708_v7 = vsel %vm1706_vm9, %v1029_v16, %v1020_v56  ;;  %1935 = vmatpush.bf16.msrb.mxu0 %v1927_v31  ;;  %v2344_v56 = vld [vmem:[%s3107_s9] ss:$0 sm:$0xff] }
 0x133   : > { %v1027_v20 = vsel %vm1025_vm0, %v1012_v4, %v1026_v5  ;;  %v1705_v63 = vsel %vm1703_vm15, %v1012_v4, %v1026_v5  ;;  %v2304_v4 = vld [vmem:[%s3108_s10 + $0x18] sm:$0xff] }
 0x134   : > { %v1031_v15 = vsel %vm1024_vm14, %v1027_v20, %v1030_v59  ;;  %v1709_v25 = vsel %vm1702_vm12, %v1705_v63, %v1708_v7  ;;  %2047 = vmatpush.bf16.msra.mxu2 %v2304_v4  ;;  %v2345_v20 = vld [vmem:[%s3109_s11] ss:$0 sm:$0xff] }
 0x135   : > { %v1032_v23 = vsel %vm1021_vm3, nan, %v1031_v15  ;;  %v1710_v2 = vsel %vm1021_vm3, nan, %v1709_v25  ;;  %1936 = vmatpush.bf16.msrb.mxu0 %v2298_v45 }
 0x136   : > { %v1188_v12 = vpack.c.bf16 %v1187_v33, %v1032_v23  ;;  %v1865_v32 = vpack.c.bf16 %v1864_v14, %v1710_v2 }
 0x138   : > { %2230 = vmatmul.msk.bf16.vlgmr.msra.gmra.mxu1 %vm854_vm1, %v1188_v12  ;;  %2254 = vmatmul.msk.bf16.vlgmr.msrb.gmra.mxu3 %vm854_vm1, %v1865_v32  ;;  %vm1974_vm1 = vcmask 1043456  }
 0x139   : > { %v1976_v39 = vsel %vm1974_vm1, %v1967_v40, 0  ;;  %2048 = vmatpush.bf16.msra.mxu2 %v2303_v30 }
 0x13a   : > { %1983 = vmatpush.bf16.msrb.mxu1 %v1976_v39 }
 0x13d   : > { %2049 = vmatpush.bf16.msra.mxu2 %v2302_v19 }
 0x141   : > { %2050 = vmatpush.bf16.msra.mxu2 %v2301_v49 }
 0x19e   : > { %v871_v17 = vpop.f32.mrf.mxu0 }
 0x19f   : > { %v876_v58 = vadd.f32 %v871_v17, %v2912_v6 }
 0x1a4   : > { %v1550_v22 = vpop.f32.mrf.mxu3 }
 0x1a6   : > { %v873_v21 = vpop.f32.mrf.mxu0 }
 0x1a7   : > { %v877_v37 = vadd.f32 %v873_v21, %v2914_v18  ;;  %v2300_v18 = vld [vmem:[%s3106_s8 + $0x8] sm:$0xff] }
 0x1a8   : > { %1984 = vmatpush.bf16.msrb.mxu1 %v2300_v18 }
 0x1ac   : > { %v1552_v38 = vpop.f32.mrf.mxu3  ;;  %1985 = vmatpush.bf16.msrb.mxu1 %v2299_v61 }
 0x1b5   : > { %v1212_v34 = vpop.f32.mrf.mxu1 }
 0x1b6   : > { %v1217_v54 = vadd.f32 %v1212_v34, %v876_v58 }
 0x1b8   : > { %v1555_v9 = vadd.f32 %v1550_v22, %v1217_v54 }
 0x1bb   : > { %v1889_v1 = vpop.f32.mrf.mxu3 }
 0x1bc   : > { %v1894_v24 = vadd.f32 %v1889_v1, %v1555_v9 }
 0x1bd   : > { %v1214_v8 = vpop.f32.mrf.mxu1 }
 0x1be   : > { %v1218_v57 = vadd.f32 %v1214_v8, %v877_v37  ;;  %v1900_v0 = vadd.f32 %v2342_v53, %v1894_v24 }
 0x1c0   : > { %v1556_v43 = vadd.f32 %v1552_v38, %v1218_v57  ;;  %v1902_v26 = vmax.f32 %v1900_v0, 0.0 }
 0x1c3   : > { %v1891_v46 = vpop.f32.mrf.mxu3 }
 0x1c4   : > { %v1895_v3 = vadd.f32 %v1891_v46, %v1556_v43 }
 0x1c6   : > { %v1901_v36 = vadd.f32 %v2342_v53, %v1895_v3 }
 0x1c8   : > { %v1903_v6 = vmax.f32 %v1901_v36, 0.0 }
 0x1ca   : > { %v1904_v41 = vpack.c.bf16 %v1903_v6, %v1902_v26 }
 0x1cc   : > { %2259 = vmatmul.msk.bf16.vlgmr.msrb.gmra.mxu0 %vm1921_vm7, %v1904_v41 }
 0x249   : > { %v1938_v42 = vpop.f32.mrf.mxu0 }
 0x24a   : > { %v1939_v50 = vadd.f32 %v2343_v35, %v1938_v42 }
 0x24c   : > { %v1943_v29 = vmax.f32 %v1939_v50, 0.0 }
 0x251   : > { %v1940_v62 = vpop.f32.mrf.mxu0 }
 0x252   : > { %v1941_v48 = vadd.f32 %v2343_v35, %v1940_v62 }
 0x254   : > { %v1944_v11 = vmax.f32 %v1941_v48, 0.0 }
 0x256   : > { %v1945_v52 = vpack.c.bf16 %v1944_v11, %v1943_v29 }
 0x258   : > { %2268 = vmatmul.msk.bf16.vlgmr.msrb.gmra.mxu1 %vm1970_vm13, %v1945_v52 }
 0x2d5   : > { %v1987_v27 = vpop.f32.mrf.mxu1 }
 0x2d6   : > { %v1988_v16 = vadd.f32 %v2344_v56, %v1987_v27 }
 0x2d8   : > { %v1992_v5 = vmax.f32 %v1988_v16, 0.0 }
 0x2dd   : > { %v1989_v13 = vpop.f32.mrf.mxu1 }
 0x2de   : > { %v1990_v10 = vadd.f32 %v2344_v56, %v1989_v13 }
 0x2e0   : > { %v1993_v33 = vmax.f32 %v1990_v10, 0.0 }
 0x2e2   : > { %v1994_v14 = vpack.c.bf16 %v1993_v33, %v1992_v5 }
 0x2e4   : > { %2289 = vmatmul.msk.bf16.vlgmr.msra.gmra.mxu2 %vm2039_vm6, %v1994_v14 }
 0x367   : > { %v2052_v59 = vpop.f32.mrf.mxu2 }
 0x368   : > { %v2053_v63 = vadd.f32 %v2345_v20, %v2052_v59 }
 0x36a   : > { %v2057_v7 = vmax.f32 %v2053_v63, 0.0 }
 0x36c   : > { %v2059_v15 = vpack.c.bf16 %v2057_v7, %v2057_v7  ;;  %v2065_v12 = vsel %vm2064_vm8, %v2057_v7, -inf }
 0x36e   : > { %2062 = vst.msk [vmem:[%s489_s15] sm:$0xf] %vm2061_vm2, %v2059_v15 }
 0x36f   : > { %v2054_v25 = vpop.f32.mrf.mxu2 }
 0x370   : > { %v2055_v23 = vadd.f32 %v2345_v20, %v2054_v25 }
 0x372   : > { %v2058_v2 = vmax.f32 %v2055_v23, 0.0 }
 0x374   : > { %v2060_v32 = vpack.c.bf16 %v2058_v2, %v2058_v2  ;;  %v2066_v44 = vsel %vm2064_vm8, %v2058_v2, -inf }
 0x375   : > { %v2067_v60 = vmax.f32 %v2065_v12, %v2066_v44 }
 0x376   : > { %2063 = vst.msk [vmem:[%s489_s15 + $0x4] sm:$0xf] %vm2061_vm2, %v2060_v32 }
 0x377   : > { %v2068_v51 = vrot.slane %v2067_v60, 4 }
 0x379   : > { %v2069_v31 = vmax.f32 %v2067_v60, %v2068_v51 }
 0x37b   : > { %v2070_v22 = vrot.slane %v2069_v31, 2 }
 0x37d   : > { %v2071_v45 = vmax.f32 %v2069_v31, %v2070_v22 }
 0x37f   : > { %v2072_v55 = vrot.slane %v2071_v45, 1 }
 0x381   : > { %v2073_v28 = vmax.f32 %v2071_v45, %v2072_v55 }
 0x383   : > { %2075 = vst.msk [vmem:[%s496_s18] sm:$0x1] %vm2074_vm10, %v2073_v28 }
 0x384 PF: > { %s24_s27 = sadd.s32 1, %s2368_s27   ;;  %s3192_s25 = smov %s2364_s26 }
 0x385   : > { %p21_p5 = scmp.ge.s32.totalorder %s24_s27, 4   ;;  %s3193_s26 = smov %s3195_s28 }
 0x387   :  { %23 = sbr.rel (!%p21_p5) target bundleno = 2 (0x2), region = 112 }

// kernel: pointnetpp_forward.3
= control target key start
LH: loop header
LB: loop body
LE: loop exit
PB: predicated region body
PF: predicated region fallthrough
CT: control target
= control target key end

     0   :  { %s1421_s18 = smov 0   ;;  %s1423_s19 = smov 0   ;;  %s1577_s0 = inlined_call_operand.vmem [shape: bf16[2,4,16,64], index: 0, kind: input, shape index: {}]   ;;  %s1578_s1 = inlined_call_operand.vmem [shape: f32[2,1,30], index: 1, kind: input, shape index: {}]   ;;  %s1579_s2 = inlined_call_operand.vmem [shape: bf16[64,30], index: 2, kind: input, shape index: {}]   ;;  %s1580_s3 = inlined_call_operand.vmem [shape: bf16[30,60], index: 3, kind: input, shape index: {}]   ;;  %s1581_s4 = inlined_call_operand.vmem [shape: f32[1,60], index: 4, kind: input, shape index: {}]   ;;  %s1582_s5 = inlined_call_operand.vmem [shape: bf16[60,20], index: 5, kind: input, shape index: {}]   ;;  %s1583_s6 = inlined_call_operand.vmem [shape: f32[1,20], index: 6, kind: input, shape index: {}]   ;;  %s1584_s7 = inlined_call_operand.vmem [shape: bf16[20,40], index: 7, kind: input, shape index: {}]   ;;  %s1585_s8 = inlined_call_operand.vmem [shape: f32[1,40], index: 8, kind: input, shape index: {}]   ;;  %s1586_s9 = inlined_call_operand.vmem [shape: bf16[40,80], index: 9, kind: input, shape index: {}]   ;;  %s1587_s10 = inlined_call_operand.vmem [shape: f32[1,80], index: 10, kind: input, shape index: {}]   ;;  %s1588_s11 = inlined_call_operand.vmem [shape: bf16[80,60], index: 11, kind: input, shape index: {}]   ;;  %s1589_s12 = inlined_call_operand.vmem [shape: f32[1,60], index: 12, kind: input, shape index: {}]   ;;  %s1590_s13 = inlined_call_operand.vmem [shape: bf16[60,128], index: 13, kind: input, shape index: {}]   ;;  %s1591_s14 = inlined_call_operand.vmem [shape: f32[1,128], index: 14, kind: input, shape index: {}]   ;;  %s1592_s15 = inlined_call_operand.vmem [shape: bf16[2,16,128], index: 15, kind: output, shape index: {}]  }
   0x1   :  { %s1425_s20 = smov 0  }
   0x2 LB: > { %s34_s21 = sadd.s32 1, %s1335_s19  ;;  %p1129_p0 = scmp.ge.s32.totalorder %s1339_s20, 1  ;;  %s1339_s20 = sphi %s1425_s20, %s25_s20   ;;  %s1335_s19 = sphi %s1423_s19, %s1594_s19   ;;  %s1331_s18 = sphi %s1421_s18, %s1593_s18  }
   0x3   : > { %p35_p1 = scmp.ge.s32.totalorder %s34_s21, 2  ;;  %p466_p2 = scmp.lt.s32.totalorder %s1339_s20, 3 }
   0x5   : > { %s1596_s21 = smov (%p35_p1, %s34_s21), 0  ;;  %p467_p3 = pnand %p1129_p0, %p466_p2 }
   0x6   : > { %p526_p4 = scmp.lt.s32.totalorder (!%p467_p3), %s1331_s18, 1 }
   0x7   : > { %470 = sbr.rel (%p467_p3) target bundleno = 1090 (0x442), region = 80 }
   0xc   : > { %v1262_v0 = vld [vmem:[%s1579_s2 + $0x18] sm:$0xff]  ;;  %v1261_v1 = vld [vmem:[%s1579_s2 + $0x10] sm:$0xff]  ;;  %s1598_s18 = smov (!%p526_p4, %s1331_s18), 1  ;;  %v1260_v2 = vld [vmem:[%s1579_s2 + $0x8] sm:$0xff]  ;;  %vm613_vm0 = vcmask 523264   ;;  %vm699_vm1 = vcmask 1046528  }
   0xd   : > { %630 = vmatpush.bf16.msra.mxu0 %v1262_v0  ;;  %s537_s28 = scalar_lea.vmem %s1578_s1, %s1598_s18  ;;  %s1253_s16 = sshll.u32 %s1598_s18, 5  ;;  %v1259_v3 = vld [vmem:[%s1579_s2] sm:$0xff]  ;;  %v1176_v8 = vld [vmem:[%s1580_s3 + $0x8] sm:$0xf]  ;;  %v1264_v9 = vld [vmem:[%s1580_s3 + $0x8] sm:$0x70] }
   0xe   : > { %s533_s25 = scalar_lea.vmem %s1577_s0, %s1253_s16  ;;  %v1177_v10 = vor.u32 %v1264_v9, %v1176_v8  ;;  %v1263_v12 = vld [vmem:[%s1580_s3] sm:$0xff]  ;;  %vm686_vm2 = vcmask 244736   ;;  %v1196_v45 = vld [vmem:[%s1582_s5 + $0x18] sm:$0xf]  ;;  %v1268_v46 = vld [vmem:[%s1582_s5 + $0x18] sm:$0x30] }
   0xf   : > { %v1255_v4 = vld [vmem:[%s533_s25] sm:$0xff]  ;;  %v1256_v5 = vld [vmem:[%s533_s25 + $0x8] sm:$0xff]  ;;  %v1257_v6 = vld [vmem:[%s533_s25 + $0x10] sm:$0xff]  ;;  %v1197_v47 = vor.u32 %v1268_v46, %v1196_v45  ;;  %vm794_vm3 = vcmask 1045504   ;;  %vm740_vm4 = vcmask 490496   ;;  %vm835_vm5 = vcmask 1041408  }
  0x10   : > { %v1258_v7 = vld [vmem:[%s533_s25 + $0x18] sm:$0xff]  ;;  %v701_v11 = vsel %vm699_vm1, %v1177_v10, 0  ;;  %v1310_v14 = vld [vmem:[%s537_s28] ss:$0 sm:$0xff]  ;;  %v1267_v49 = vld [vmem:[%s1582_s5 + $0x10] sm:$0xff]  ;;  %vm884_vm6 = vcmask 1043456  }
  0x11   : > { %631 = vmatpush.bf16.msra.mxu0 %v1261_v1  ;;  %709 = vmatpush.bf16.msra.mxu1 %v701_v11  ;;  %v796_v48 = vsel %vm794_vm3, %v1197_v47, 0  ;;  %v1266_v51 = vld [vmem:[%s1582_s5 + $0x8] sm:$0xff]  ;;  %v1265_v52 = vld [vmem:[%s1582_s5] sm:$0xff]  ;;  %vm831_vm7 = vcmask 162816   ;;  %vm880_vm8 = vcmask 326656   ;;  %vm949_vm9 = vcmask 654336  }
  0x12   : > { %802 = vmatpush.bf16.msra.mxu2 %v796_v48  ;;  %v1311_v55 = vld [vmem:[%s1581_s4] ss:$0 sm:$0xff]  ;;  %s1254_s30 = sshll.u32 %s1598_s18, 3 }
  0x13   : > { %v1270_v47 = vld [vmem:[%s1586_s9] sm:$0xff]  ;;  %s546_s28 = scalar_lea.vmem %s1592_s15, %s1254_s30 }
  0x14   : > { %v1276_v48 = vld [vmem:[%s1588_s11 + $0x20] sm:$0xff] }
  0x15   : > { %632 = vmatpush.bf16.msra.mxu0 %v1260_v2  ;;  %710 = vmatpush.bf16.msra.mxu1 %v1263_v12 }
  0x16   : > { %803 = vmatpush.bf16.msra.mxu2 %v1267_v49 }
  0x19   : > { %633 = vmatpush.bf16.msra.mxu0 %v1259_v3 }
  0x1a   : > { %804 = vmatpush.bf16.msra.mxu2 %v1266_v51 }
  0x1c   : > { %1166 = vmatmul.msk.bf16.vlgmr.msra.gmra.mxu0 %vm613_vm0, %v1255_v4 }
  0x1e   : > { %805 = vmatpush.bf16.msra.mxu2 %v1265_v52 }
  0x22   : > { %956 = vmatpush.bf16.msrb.mxu2 %v1276_v48 }
  0x2c   : > { %1167 = vmatmul.msk.bf16.gmra.mxu0 %vm613_vm0, %v1256_v5 }
  0x3c   : > { %1168 = vmatmul.msk.bf16.gmra.mxu0 %vm613_vm0, %v1257_v6 }
  0x4c   : > { %1169 = vmatmul.msk.bf16.gmra.mxu0 %vm613_vm0, %v1258_v7 }
  0x99   : > { %v635_v13 = vpop.f32.mrf.mxu0 }
  0x9a   : > { %v636_v15 = vadd.f32 %v1310_v14, %v635_v13 }
  0x9c   : > { %v655_v18 = vmax.f32 %v636_v15, 0.0 }
  0xa1   : > { %v637_v16 = vpop.f32.mrf.mxu0 }
  0xa2   : > { %v638_v17 = vadd.f32 %v1310_v14, %v637_v16 }
  0xa4   : > { %v656_v19 = vmax.f32 %v638_v17, 0.0 }
  0xa6   : > { %v663_v20 = vpack.c.bf16 %v656_v19, %v655_v18 }
  0xa8   : > { %1178 = vmatmul.msk.bf16.vlgmr.msra.gmra.mxu1 %vm686_vm2, %v663_v20 }
  0xa9   : > { %v640_v21 = vpop.f32.mrf.mxu0 }
  0xaa   : > { %v641_v22 = vadd.f32 %v1310_v14, %v640_v21 }
  0xac   : > { %v657_v25 = vmax.f32 %v641_v22, 0.0 }
  0xb1   : > { %v642_v23 = vpop.f32.mrf.mxu0 }
  0xb2   : > { %v643_v24 = vadd.f32 %v1310_v14, %v642_v23 }
  0xb4   : > { %v658_v26 = vmax.f32 %v643_v24, 0.0 }
  0xb6   : > { %v664_v27 = vpack.c.bf16 %v658_v26, %v657_v25  ;;  %v817_v25 = vld [vmem:[%s1584_s7 + $0x8] sm:$0x3] }
  0xb7   : > { %v827_v26 = vunpack.c.l.b16 %v817_v25 }
  0xb8   : > { %1179 = vmatmul.msk.bf16.gmra.mxu1 %vm686_vm2, %v664_v27 }
  0xb9   : > { %v645_v28 = vpop.f32.mrf.mxu0  ;;  %v829_v27 = vpack.c.b16 %v827_v26, %v827_v26 }
  0xba   : > { %v646_v29 = vadd.f32 %v1310_v14, %v645_v28 }
  0xbb   : > { %v837_v28 = vsel %vm835_vm5, %v829_v27, 0 }
  0xbc   : > { %v659_v32 = vmax.f32 %v646_v29, 0.0  ;;  %845 = vmatpush.bf16.msra.mxu3 %v837_v28  ;;  %v1269_v29 = vld [vmem:[%s1584_s7] sm:$0xff] }
  0xc0   : > { %846 = vmatpush.bf16.msra.mxu3 %v1269_v29 }
  0xc1   : > { %v647_v30 = vpop.f32.mrf.mxu0 }
  0xc2   : > { %v648_v31 = vadd.f32 %v1310_v14, %v647_v30  ;;  %v860_v30 = vld [vmem:[%s1586_s9 + $0x10] sm:$0xf] }
  0xc4   : > { %v660_v33 = vmax.f32 %v648_v31, 0.0  ;;  %v874_v31 = vunpack.c.l.b16 %v860_v30 }
  0xc6   : > { %v665_v34 = vpack.c.bf16 %v660_v33, %v659_v32  ;;  %v877_v32 = vpack.c.b16 %v874_v31, %v874_v31 }
  0xc8   : > { %1180 = vmatmul.msk.bf16.gmra.mxu1 %vm686_vm2, %v665_v34  ;;  %v886_v33 = vsel %vm884_vm6, %v877_v32, 0 }
  0xc9   : > { %v650_v35 = vpop.f32.mrf.mxu0  ;;  %893 = vmatpush.bf16.msrb.mxu3 %v886_v33 }
  0xca   : > { %v651_v36 = vadd.f32 %v1310_v14, %v650_v35  ;;  %v1312_v35 = vld [vmem:[%s1583_s6] ss:$0 sm:$0xff] }
  0xcc   : > { %v661_v39 = vmax.f32 %v651_v36, 0.0 }
  0xd1   : > { %v652_v37 = vpop.f32.mrf.mxu0 }
  0xd2   : > { %v653_v38 = vadd.f32 %v1310_v14, %v652_v37 }
  0xd4   : > { %v662_v40 = vmax.f32 %v653_v38, 0.0 }
  0xd6   : > { %v666_v41 = vpack.c.bf16 %v662_v40, %v661_v39 }
  0xd8   : > { %1181 = vmatmul.msk.bf16.gmra.mxu1 %vm686_vm2, %v666_v41 }
 0x125   : > { %v712_v42 = vpop.f32.mrf.mxu1 }
 0x126   : > { %v713_v61 = vadd.f32 %v1311_v55, %v712_v42  ;;  %v1248_v42 = vld [vmem:[%s1590_s13 + $0x18] sm:$0xf] }
 0x128   : > { %v732_v4 = vmax.f32 %v713_v61, 0.0 }
 0x12a   : > { %v741_v15 = vsel %vm740_vm4, %v732_v4, -inf }
 0x12d   : > { %v714_v43 = vpop.f32.mrf.mxu1 }
 0x12e   : > { %v715_v62 = vadd.f32 %v1311_v55, %v714_v43  ;;  %v1280_v43 = vld [vmem:[%s1590_s13 + $0x18] sm:$0x30] }
 0x12f   : > { %v1249_v45 = vor.u32 %v1280_v43, %v1248_v42 }
 0x130   : > { %v733_v6 = vmax.f32 %v715_v62, 0.0  ;;  %v1314_v62 = vld [vmem:[%s1587_s10] ss:$0 sm:$0xff] }
 0x131   : > { %v1009_v46 = vsel %vm794_vm3, %v1249_v45, 0 }
 0x132   : > { %v748_v16 = vsel %vm740_vm4, %v733_v6, -inf  ;;  %v1278_v6 = vld [vmem:[%s1590_s13 + $0x8] sm:$0xff] }
 0x135   : > { %v717_v44 = vpop.f32.mrf.mxu1 }
 0x136   : > { %v718_v58 = vadd.f32 %v1311_v55, %v717_v44  ;;  %v1271_v44 = vld [vmem:[%s1586_s9 + $0x8] sm:$0xff] }
 0x137   : > { %894 = vmatpush.bf16.msrb.mxu3 %v1271_v44 }
 0x138   : > { %v734_v1 = vmax.f32 %v718_v58, 0.0  ;;  %v1274_v58 = vld [vmem:[%s1588_s11 + $0x10] sm:$0xff] }
 0x13a   : > { %v742_v10 = vsel %vm740_vm4, %v734_v1, -inf }
 0x13b   : > { %895 = vmatpush.bf16.msrb.mxu3 %v1270_v47 }
 0x13d   : > { %v719_v50 = vpop.f32.mrf.mxu1 }
 0x13e   : > { %v720_v63 = vadd.f32 %v1311_v55, %v719_v50  ;;  %v1313_v50 = vld [vmem:[%s1585_s8] ss:$0 sm:$0xff] }
 0x140   : > { %v735_v7 = vmax.f32 %v720_v63, 0.0 }
 0x142   : > { %v749_v17 = vsel %vm740_vm4, %v735_v7, -inf  ;;  %v1277_v7 = vld [vmem:[%s1590_s13] sm:$0xff] }
 0x145   : > { %v722_v53 = vpop.f32.mrf.mxu1 }
 0x146   : > { %v723_v59 = vadd.f32 %v1311_v55, %v722_v53 }
 0x148   : > { %v736_v2 = vmax.f32 %v723_v59, 0.0  ;;  %v1273_v59 = vld [vmem:[%s1588_s11 + $0x8] sm:$0xff] }
 0x14a   : > { %v743_v11 = vsel %vm740_vm4, %v736_v2, -inf }
 0x14b   : > { %v744_v19 = vmax.f32 %v741_v15, %v743_v11 }
 0x14d   : > { %v724_v54 = vpop.f32.mrf.mxu1 }
 0x14e   : > { %v725_v60 = vadd.f32 %v1311_v55, %v724_v54 }
 0x150   : > { %v737_v3 = vmax.f32 %v725_v60, 0.0  ;;  %v1272_v60 = vld [vmem:[%s1588_s11] sm:$0xff] }
 0x152   : > { %v750_v12 = vsel %vm740_vm4, %v737_v3, -inf }
 0x153   : > { %v751_v20 = vmax.f32 %v748_v16, %v750_v12 }
 0x155   : > { %v727_v56 = vpop.f32.mrf.mxu1 }
 0x156   : > { %v728_v57 = vadd.f32 %v1311_v55, %v727_v56 }
 0x158   : > { %v738_v0 = vmax.f32 %v728_v57, 0.0  ;;  %v1275_v57 = vld [vmem:[%s1588_s11 + $0x18] sm:$0xff] }
 0x159   : > { %957 = vmatpush.bf16.msrb.mxu2 %v1275_v57 }
 0x15a   : > { %v745_v8 = vsel %vm740_vm4, %v738_v0, -inf }
 0x15b   : > { %v746_v14 = vmax.f32 %v742_v10, %v745_v8 }
 0x15d   : > { %v729_v5 = vpop.f32.mrf.mxu1  ;;  %v747_v22 = vmax.f32 %v744_v19, %v746_v14  ;;  %958 = vmatpush.bf16.msrb.mxu2 %v1274_v58 }
 0x15e   : > { %v730_v9 = vadd.f32 %v1311_v55, %v729_v5  ;;  %v1279_v5 = vld [vmem:[%s1590_s13 + $0x10] sm:$0xff] }
 0x160   : > { %v739_v13 = vmax.f32 %v730_v9, 0.0  ;;  %v1315_v9 = vld [vmem:[%s1589_s12] ss:$0 sm:$0xff] }
 0x161   : > { %959 = vmatpush.bf16.msrb.mxu2 %v1273_v59 }
 0x162   : > { %v752_v18 = vsel %vm740_vm4, %v739_v13, -inf }
 0x163   : > { %v753_v21 = vmax.f32 %v749_v17, %v752_v18  ;;  %v1316_v17 = vld [vmem:[%s1591_s14] ss:$0 sm:$0xff] }
 0x165   : > { %v754_v23 = vmax.f32 %v751_v20, %v753_v21  ;;  %960 = vmatpush.bf16.msrb.mxu2 %v1272_v60 }
 0x167   : > { %v755_v24 = vpack.c.bf16 %v754_v23, %v747_v22 }
 0x169   : > { %1198 = vmatmul.msk.bf16.vlgmr.msra.gmra.mxu2 %vm740_vm4, %v755_v24 }
 0x1ec   : > { %v807_v34 = vpop.f32.mrf.mxu2 }
 0x1ed   : > { %v808_v36 = vadd.f32 %v1312_v35, %v807_v34 }
 0x1ef   : > { %v812_v39 = vmax.f32 %v808_v36, 0.0 }
 0x1f4   : > { %v809_v37 = vpop.f32.mrf.mxu2 }
 0x1f5   : > { %v810_v38 = vadd.f32 %v1312_v35, %v809_v37 }
 0x1f7   : > { %v813_v40 = vmax.f32 %v810_v38, 0.0 }
 0x1f9   : > { %v814_v41 = vpack.c.bf16 %v813_v40, %v812_v39 }
 0x1fb   : > { %1203 = vmatmul.msk.bf16.vlgmr.msra.gmra.mxu3 %vm831_vm7, %v814_v41 }
 0x1fc   : > { %1015 = vmatpush.bf16.msra.mxu3 %v1009_v46 }
 0x200   : > { %1016 = vmatpush.bf16.msra.mxu3 %v1279_v5 }
 0x204   : > { %1017 = vmatpush.bf16.msra.mxu3 %v1278_v6 }
 0x208   : > { %1018 = vmatpush.bf16.msra.mxu3 %v1277_v7 }
 0x27e   : > { %v848_v49 = vpop.f32.mrf.mxu3 }
 0x27f   : > { %v849_v51 = vadd.f32 %v1313_v50, %v848_v49 }
 0x281   : > { %v853_v54 = vmax.f32 %v849_v51, 0.0 }
 0x286   : > { %v850_v52 = vpop.f32.mrf.mxu3 }
 0x287   : > { %v851_v53 = vadd.f32 %v1313_v50, %v850_v52 }
 0x289   : > { %v854_v55 = vmax.f32 %v851_v53, 0.0 }
 0x28b   : > { %v855_v56 = vpack.c.bf16 %v854_v55, %v853_v54 }
 0x28d   : > { %1212 = vmatmul.msk.bf16.vlgmr.msrb.gmra.mxu3 %vm880_vm8, %v855_v56 }
 0x310   : > { %v897_v61 = vpop.f32.mrf.mxu3 }
 0x311   : > { %v898_v63 = vadd.f32 %v1314_v62, %v897_v61 }
 0x313   : > { %v902_v2 = vmax.f32 %v898_v63, 0.0 }
 0x318   : > { %v899_v0 = vpop.f32.mrf.mxu3 }
 0x319   : > { %v900_v1 = vadd.f32 %v1314_v62, %v899_v0 }
 0x31b   : > { %v903_v3 = vmax.f32 %v900_v1, 0.0 }
 0x31d   : > { %v904_v4 = vpack.c.bf16 %v903_v3, %v902_v2 }
 0x31f   : > { %1233 = vmatmul.msk.bf16.vlgmr.msrb.gmra.mxu2 %vm949_vm9, %v904_v4 }
 0x3a2   : > { %v962_v8 = vpop.f32.mrf.mxu2 }
 0x3a3   : > { %v963_v10 = vadd.f32 %v1315_v9, %v962_v8 }
 0x3a5   : > { %v967_v13 = vmax.f32 %v963_v10, 0.0 }
 0x3aa   : > { %v964_v11 = vpop.f32.mrf.mxu2 }
 0x3ab   : > { %v965_v12 = vadd.f32 %v1315_v9, %v964_v11 }
 0x3ad   : > { %v968_v14 = vmax.f32 %v965_v12, 0.0 }
 0x3af   : > { %v969_v15 = vpack.c.bf16 %v968_v14, %v967_v13 }
 0x3b1   : > { %1250 = vmatmul.msk.bf16.vlgmr.msra.gmra.mxu3 %vm740_vm4, %v969_v15 }
 0x434   : > { %v1020_v16 = vpop.f32.mrf.mxu3 }
 0x435   : > { %v1021_v19 = vadd.f32 %v1316_v17, %v1020_v16 }
 0x43c   : > { %v1022_v18 = vpop.f32.mrf.mxu3 }
 0x43d   : > { %v1023_v20 = vadd.f32 %v1316_v17, %v1022_v18 }
 0x43f   : > { %v1284_v21 = vpack.c.bf16 %v1023_v20, %v1021_v19 }
 0x441   : > { %1285 = vst [vmem:[%s546_s28] sm:$0xff] %v1284_v21  }
 0x442 PF: > { %s25_s20 = sadd.s32 1, %s1339_s20   ;;  %s1593_s18 = smov %s1335_s19 }
 0x443   : > { %p22_p5 = scmp.ge.s32.totalorder %s25_s20, 4   ;;  %s1594_s19 = smov %s1596_s21 }
 0x445   :  { %24 = sbr.rel (!%p22_p5) target bundleno = 2 (0x2), region = 113 }

</bundles_post_ra>
